<compile_context>
chip_gen: v7x
topology: tpu7x:2x2x1
jax: 0.10.0
libtpu: 0.0.40
codegen_flags: <defaults>
</compile_context>

<pallas_src>
import functools
import math

import jax
import jax.numpy as jnp
from jax.experimental import pallas as pl
from jax.experimental.pallas import tpu as pltpu

LN_EPS = 1e-5   # PyTorch nn.LayerNorm default
NEG_INF = -1e30

_LAYER_PARAM_NAMES = ("ln1w", "ln1b", "wqkv", "wo", "bo",
                      "ln2w", "ln2b", "w1", "b1", "w2", "b2")
# large streamed weights go over HBM in bf16 (f32 accumulation in the MXU)
_BF16_STREAMED = frozenset({"wqkv", "wo", "w1", "w2"})


def _round_up(x, m):
    return ((x + m - 1) // m) * m


def _layernorm(x, w, b):
    mu = jnp.mean(x, axis=-1, keepdims=True)
    var = jnp.mean((x - mu) ** 2, axis=-1, keepdims=True)
    return (x - mu) * jax.lax.rsqrt(var + LN_EPS) * w + b


def _gelu(x):
    # TODO(synk): PyTorch nn.GELU defaults to the exact erf GELU; the tanh
    # approximation is used here for guaranteed Mosaic lowering (diff ~1e-3).
    return jax.nn.gelu(x, approximate=True)


# --------------- fully fused ViT kernel (patch-embed + stack + head) ---------------
def _vit_fused_kernel(patch_ref, pw_ref, pb_ref, cls_ref, pos_ref,
                      ln1w, ln1b, wqkv, wo, bo, ln2w, ln2b, w1, b1, w2, b2,
                      hlnw, hlnb, hw, hb,
                      out_ref, x_sc, att_sc,
                      *, heads, dim_head, scale, n_valid):
    d = pl.program_id(1)                         # depth index (inner, "arbitrary")
    Bt, N1p, D = x_sc.shape
    P = patch_ref.shape[-1]
    M = Bt * N1p
    inner = heads * dim_head
    bf16 = jnp.bfloat16

    # ------------- d == 0: patch embedding + cls token + pos embedding -------------
    # patch_ref rows are already token-aligned: row 0 is a zero placeholder for the
    # cls token, rows 1..N hold the patches, rows >= n_valid are zero padding.
    @pl.when(d == 0)
    def _():
        emb = (jnp.dot(patch_ref[...].reshape(M, P), pw_ref[...],
                       preferred_element_type=jnp.float32) + pb_ref[...])
        emb3 = emb.reshape(Bt, N1p, D)
        tok_idx = jax.lax.broadcasted_iota(jnp.int32, (Bt, N1p, D), 1)
        cls_b = jnp.broadcast_to(cls_ref[...], (Bt, N1p, D))
        x0 = jnp.where(tok_idx == 0, cls_b,
                       jnp.where(tok_idx < n_valid, emb3, 0.0))
        # pos_ref is zero-padded beyond n_valid, so padded token rows stay zero
        x_sc[...] = x0 + pos_ref[...]

    x = x_sc[...].reshape(M, D)                                     # (M, D) f32

    # ---------------- PreNorm + multi-head self-attention ----------------
    h = _layernorm(x, ln1w[0], ln1b[0]).astype(bf16)
    qkv = jnp.dot(h, wqkv[0], preferred_element_type=jnp.float32)   # (M, 3*inner)
    q = (qkv[:, :inner] * scale).reshape(Bt, N1p, inner)            # scale folded in q
    k = qkv[:, inner:2 * inner].reshape(Bt, N1p, inner)
    v = qkv[:, 2 * inner:].reshape(Bt, N1p, inner)

    if n_valid < N1p:   # additive mask for zero-padded key positions
        key_idx = jax.lax.broadcasted_iota(jnp.int32, (1, 1, N1p), 2)
        kmask = jnp.where(key_idx < n_valid, 0.0, NEG_INF).astype(jnp.float32)
    else:
        kmask = None

    # heads is small and statically unrolled; each head's output goes into a
    # column slice of the preallocated VMEM scratch (no concatenate, fewer
    # simultaneously-live temporaries).  Contraction is on the minor dim of
    # both q and k ("bnd,bmd->bnm"), the Mosaic-native form (no K transpose).
    for hh in range(heads):
        lo = hh * dim_head
        qh = q[:, :, lo:lo + dim_head].astype(bf16)
        kh = k[:, :, lo:lo + dim_head].astype(bf16)
        vh = v[:, :, lo:lo + dim_head].astype(bf16)
        dots = jnp.einsum("bnd,bmd->bnm", qh, kh,
                          preferred_element_type=jnp.float32)       # (Bt, N1p, N1p)
        if kmask is not None:
            dots = dots + kmask
        m = jnp.max(dots, axis=-1, keepdims=True)
        e = jnp.exp(dots - m)
        attn = e * pl.reciprocal(jnp.sum(e, axis=-1, keepdims=True), approx=True)
        ho = jnp.einsum("bnm,bmd->bnd", attn.astype(bf16), vh,
                        preferred_element_type=jnp.float32)          # (Bt, N1p, dh)
        att_sc[:, lo:lo + dim_head] = ho.reshape(M, dim_head)

    att = att_sc[...].astype(bf16)
    x = x + jnp.dot(att, wo[0], preferred_element_type=jnp.float32) + bo[0]

    # ---------------- PreNorm + FeedForward ----------------
    h = _layernorm(x, ln2w[0], ln2b[0]).astype(bf16)
    h1 = _gelu(jnp.dot(h, w1[0], preferred_element_type=jnp.float32) + b1[0])
    x = x + jnp.dot(h1.astype(bf16), w2[0],
                    preferred_element_type=jnp.float32) + b2[0]

    x_sc[...] = x.reshape(Bt, N1p, D)                               # carry to next layer

    # ------------- classifier head on the final layer's cls token -------------
    @pl.when(d == pl.num_programs(1) - 1)
    def _():
        cls = x.reshape(Bt, N1p, D)[:, 0:1, :].reshape(Bt, D)
        hc = _layernorm(cls, hlnw[...], hlnb[...])
        logits = jnp.dot(hc, hw[...], preferred_element_type=jnp.float32) + hb[...]
        out_ref[...] = logits.reshape(out_ref.shape)


def _vmem_capacity_bytes():
    try:
        return int(pltpu.get_tpu_info().vmem_capacity_bytes)
    except Exception:
        return 64 << 20          # conservative default (v7x-sized core)


def fused_vit(xp_tok, patch_w, patch_b, cls_tok, pos, layer_stacks,
              hlnw, hlnb, hw, hb, *, heads, dim_head, scale, n_valid):
    B, N1p, P = xp_tok.shape
    D = patch_w.shape[1]
    depth = layer_stacks[0].shape[0]
    Cp = hw.shape[1]
    inner = heads * dim_head
    hidden = layer_stacks[_LAYER_PARAM_NAMES.index("w1")].shape[-1]

    # ---- generation-aware VMEM cap (headroom for Mosaic internal scratch) ----
    phys = _vmem_capacity_bytes()
    if phys <= (64 << 20):                       # v7x-class core (64 MiB)
        vmem_cap = phys - (14 << 20)
        target_rows = 256
    else:                                        # v5e / v6e (128 MiB physical)
        vmem_cap = min(phys - (24 << 20), 100 << 20)
        target_rows = 512                        # bigger M: fewer weight re-streams

    # ---- actual VMEM requirement for a given batch block ----
    per_layer_bytes = sum(int(a.size // depth) * a.dtype.itemsize for a in layer_stacks)
    const_bytes = sum(int(a.size) * a.dtype.itemsize
                      for a in (patch_w, patch_b, cls_tok, pos, hlnw, hlnb, hw, hb))
    fixed = 2 * per_layer_bytes + 2 * const_bytes + (2 << 20)

    def act_bytes(bb):
        m = bb * N1p
        return (m * D * 4                                   # resident x scratch
                + m * inner * 4                             # attention-out scratch
                + 2 * bb * N1p * P * 4                      # double-buffered patch block
                + 2 * bb * Cp * 4                           # double-buffered output
                + 4 * m * max(3 * inner, hidden, D) * 4)    # matmul temporaries headroom

    # ---- pick block_b: fill the MXU M dim, keep >= 2 batch programs (v7x has
    #      2 TensorCores), respect the VMEM budget; pad B instead of needing a divisor.
    desired_b = max(1, -(-target_rows // N1p))
    cap_b = max(1, B // 2)                        # nb >= 2 whenever B >= 2
    block_b = max(1, min(desired_b, cap_b))
    while block_b > 1 and fixed + act_bytes(block_b) > vmem_cap:
        block_b -= 1
    nb = -(-B // block_b)
    Bp = nb * block_b
    if Bp != B:
        xp_tok = jnp.pad(xp_tok, ((0, Bp - B), (0, 0), (0, 0)))

    vmem_limit = int(min(vmem_cap, max(fixed + act_bytes(block_b), 32 << 20)))
    # TODO(synk): for ViT-B-scale dims on v7x, stream wqkv/w1/w2 in fp8 and/or
    # move the patch-input block to memory_space=pl.ANY with a one-shot manual
    # DMA at d==0 if this budget still does not fit the 64 MiB core.
    # TODO(synk): on v5e/v6e with spare VMEM, bump the big weight BlockSpecs to
    # pipeline_mode=pl.Buffered(3) if a trace shows the weight DMA exposed.

    kernel = functools.partial(_vit_fused_kernel, heads=heads, dim_head=dim_head,
                               scale=scale, n_valid=n_valid)

    def layer_spec(a):      # per-layer weight, streamed along the depth grid axis
        return pl.BlockSpec((1,) + a.shape[1:], lambda b, d: (d, 0, 0))

    def const_spec(a):      # grid-invariant weight (fetched once)
        return pl.BlockSpec(a.shape, lambda b, d, _n=a.ndim: (0,) * _n)

    out = pl.pallas_call(
        kernel,
        out_shape=jax.ShapeDtypeStruct((Bp, 1, Cp), jnp.float32),
        grid=(nb, depth),
        in_specs=[pl.BlockSpec((block_b, N1p, P), lambda b, d: (b, 0, 0)),
                  const_spec(patch_w), const_spec(patch_b),
                  const_spec(cls_tok), const_spec(pos)]
                 + [layer_spec(a) for a in layer_stacks]
                 + [const_spec(a) for a in (hlnw, hlnb, hw, hb)],
        out_specs=pl.BlockSpec((block_b, 1, Cp), lambda b, d: (b, 0, 0)),
        scratch_shapes=[pltpu.VMEM((block_b, N1p, D), jnp.float32),
                        pltpu.VMEM((block_b * N1p, inner), jnp.float32)],
        compiler_params=pltpu.CompilerParams(
            dimension_semantics=("parallel", "arbitrary"),
            vmem_limit_bytes=vmem_limit),
    )(xp_tok, patch_w, patch_b, cls_tok, pos, *layer_stacks, hlnw, hlnb, hw, hb)
    return out[:, 0]                                                # (Bp, Cp)


# ------------------------------ full ViT ------------------------------
def _patchify(img, patch_size):
    # 'b c (h p1) (w p2) -> b (h w) (p1 p2 c)'
    B, C, H, W = img.shape
    p = patch_size
    Hn, Wn = H // p, W // p
    x = img.reshape(B, C, Hn, p, Wn, p)
    x = x.transpose(0, 2, 4, 3, 5, 1)                 # b h w p1 p2 c
    return x.reshape(B, Hn * Wn, p * p * C)


def vit_forward(img, params, *, patch_size, heads, dim_head):
    B = img.shape[0]
    xp = _patchify(img, patch_size)                              # (B, N, P)
    _, N, P = xp.shape
    D = params["patch_w"].shape[1]

    n_valid = N + 1
    N1p = _round_up(n_valid, 8)                  # sublane-align the token axis

    # Token-aligned patch matrix: row 0 reserved for the cls token, rows 1..N
    # hold patches, rows >= n_valid are zero padding.  The fused kernel does
    # the patch GEMM + cls/pos assembly itself, so no (B, N+1, D) activation
    # ever round-trips through HBM.
    xp_tok = jnp.pad(xp, ((0, 0), (1, N1p - n_valid), (0, 0)))

    pos = params["pos_embedding"][:, :n_valid]
    pos = jnp.pad(pos, ((0, 0), (0, N1p - n_valid), (0, 0)))
    # dropout / DropPath have p=0 -> identity (inference semantics)

    # stack layer params along depth; stream big matmul weights in bf16
    layer_stacks = []
    for name in _LAYER_PARAM_NAMES:
        arr = jnp.stack([lp[name] for lp in params["layers"]], axis=0)
        if name in _BF16_STREAMED:
            arr = arr.astype(jnp.bfloat16)
        layer_stacks.append(arr)

    # lane-pad the classifier so the only HBM store is a full 128-lane slab
    n_classes = params["head_w"].shape[1]
    Cp = _round_up(n_classes, 128)
    head_w = jnp.pad(params["head_w"], ((0, 0), (0, Cp - n_classes)))
    head_b = jnp.pad(params["head_b"], ((0, 0), (0, Cp - n_classes)))

    logits = fused_vit(
        xp_tok, params["patch_w"], params["patch_b"], params["cls_token"], pos,
        layer_stacks, params["head_lnw"], params["head_lnb"], head_w, head_b,
        heads=heads, dim_head=dim_head, scale=dim_head ** (-0.5), n_valid=n_valid)
    return logits[:B, :n_classes]


# ------------------------- deterministic init -------------------------
def _xavier_normal(key, fan_in, fan_out):
    std = math.sqrt(2.0 / (fan_in + fan_out))
    return std * jax.random.normal(key, (fan_in, fan_out), jnp.float32)


def init_params(key, *, patch_dim, dim, depth, heads, dim_head, mlp_ratio,
                num_classes, num_patches):
    inner = heads * dim_head
    hidden = dim * mlp_ratio
    keys = jax.random.split(key, 4 + 4 * depth)
    f32 = jnp.float32
    params = {
        "patch_w": _xavier_normal(keys[0], patch_dim, dim),
        "patch_b": jnp.zeros((1, dim), f32),
        "pos_embedding": jax.random.normal(keys[1], (1, num_patches + 1, dim), f32),
        "cls_token": jax.random.normal(keys[2], (1, 1, dim), f32),
        "head_lnw": jnp.ones((1, dim), f32),
        "head_lnb": jnp.zeros((1, dim), f32),
        "head_w": _xavier_normal(keys[3], dim, num_classes),
        "head_b": jnp.zeros((1, num_classes), f32),
        "layers": [],
    }
    for i in range(depth):
        k0, k1, k2, k3 = keys[4 + 4 * i: 8 + 4 * i]
        params["layers"].append({
            "ln1w": jnp.ones((1, dim), f32), "ln1b": jnp.zeros((1, dim), f32),
            "wqkv": _xavier_normal(k0, dim, 3 * inner),
            "wo": _xavier_normal(k1, inner, dim), "bo": jnp.zeros((1, dim), f32),
            "ln2w": jnp.ones((1, dim), f32), "ln2b": jnp.zeros((1, dim), f32),
            "w1": _xavier_normal(k2, dim, hidden), "b1": jnp.zeros((1, hidden), f32),
            "w2": _xavier_normal(k3, hidden, dim), "b2": jnp.zeros((1, dim), f32),
        })
    return params


# --------------------------- pure-JAX reference ---------------------------
def ref_forward(img, params, *, patch_size, heads, dim_head):
    hp = jax.lax.Precision.HIGHEST
    B = img.shape[0]
    xp = _patchify(img, patch_size)
    x = jnp.einsum("bnp,pd->bnd", xp, params["patch_w"], precision=hp) + params["patch_b"]
    D = x.shape[-1]
    cls = jnp.broadcast_to(params["cls_token"], (B, 1, D))
    x = jnp.concatenate([cls, x], axis=1)
    x = x + params["pos_embedding"][:, : x.shape[1]]
    scale = dim_head ** (-0.5)
    for lp in params["layers"]:
        N1 = x.shape[1]
        h = _layernorm(x, lp["ln1w"], lp["ln1b"])
        qkv = jnp.einsum("bnd,de->bne", h, lp["wqkv"], precision=hp)
        inner = heads * dim_head
        q, k, v = qkv[..., :inner], qkv[..., inner:2 * inner], qkv[..., 2 * inner:]
        q = q.reshape(B, N1, heads, dim_head).transpose(0, 2, 1, 3)
        k = k.reshape(B, N1, heads, dim_head).transpose(0, 2, 1, 3)
        v = v.reshape(B, N1, heads, dim_head).transpose(0, 2, 1, 3)
        dots = jnp.einsum("bhid,bhjd->bhij", q, k, precision=hp) * scale
        attn = jax.nn.softmax(dots, axis=-1)
        out = jnp.einsum("bhij,bhjd->bhid", attn, v, precision=hp)
        out = out.transpose(0, 2, 1, 3).reshape(B, N1, inner)
        out = jnp.einsum("bni,id->bnd", out, lp["wo"], precision=hp) + lp["bo"]
        x = x + out
        h = _layernorm(x, lp["ln2w"], lp["ln2b"])
        h1 = _gelu(jnp.einsum("bnd,dh->bnh", h, lp["w1"], precision=hp) + lp["b1"])
        x = x + jnp.einsum("bnh,hd->bnd", h1, lp["w2"], precision=hp) + lp["b2"]
    c = _layernorm(x[:, 0], params["head_lnw"], params["head_lnb"])
    return jnp.einsum("bd,dc->bc", c, params["head_w"], precision=hp) + params["head_b"]


if __name__ == "__main__":
    # small ViT config: img 16x16, patch 4 -> 16 patches (+1 cls token = 17)
    B, C, IMG, PATCH = 2, 3, 16, 4
    DIM, DEPTH, HEADS, DIM_HEAD, MLP_RATIO, NUM_CLASSES = 32, 2, 4, 16, 2, 10
    num_patches = (IMG // PATCH) ** 2
    patch_dim = C * PATCH * PATCH

    key = jax.random.PRNGKey(0)
    kp, kx = jax.random.split(key)
    params = init_params(kp, patch_dim=patch_dim, dim=DIM, depth=DEPTH,
                         heads=HEADS, dim_head=DIM_HEAD, mlp_ratio=MLP_RATIO,
                         num_classes=NUM_CLASSES, num_patches=num_patches)
    img = jax.random.normal(kx, (B, C, IMG, IMG), jnp.float32)

    out = vit_forward(img, params, patch_size=PATCH, heads=HEADS, dim_head=DIM_HEAD)
    out = jax.block_until_ready(out)
    assert out.shape == (B, NUM_CLASSES), out.shape

    ref = ref_forward(img, params, patch_size=PATCH, heads=HEADS, dim_head=DIM_HEAD)
    max_diff = float(jnp.max(jnp.abs(out - ref)))
    # bf16 weight streaming + tanh-GELU + approx reciprocal -> slightly looser bound
    assert jnp.allclose(out, ref, atol=1e-1, rtol=1e-1), f"max diff {max_diff}"

    print("KERNEL_OK")
</pallas_src>

<mosaic_0001>
module attributes {stable_mosaic.version = 11 : i64} {
  func.func @_vit_fused_kernel(%arg0: i32, %arg1: i32, %arg2: memref<1x24x48xf32, #tpu.memory_space<vmem>>, %arg3: memref<48x32xf32, #tpu.memory_space<vmem>>, %arg4: memref<1x32xf32, #tpu.memory_space<vmem>>, %arg5: memref<1x1x32xf32, #tpu.memory_space<vmem>>, %arg6: memref<1x24x32xf32, #tpu.memory_space<vmem>>, %arg7: memref<1x1x32xf32, #tpu.memory_space<vmem>>, %arg8: memref<1x1x32xf32, #tpu.memory_space<vmem>>, %arg9: memref<1x32x192xbf16, #tpu.memory_space<vmem>>, %arg10: memref<1x64x32xbf16, #tpu.memory_space<vmem>>, %arg11: memref<1x1x32xf32, #tpu.memory_space<vmem>>, %arg12: memref<1x1x32xf32, #tpu.memory_space<vmem>>, %arg13: memref<1x1x32xf32, #tpu.memory_space<vmem>>, %arg14: memref<1x32x64xbf16, #tpu.memory_space<vmem>>, %arg15: memref<1x1x64xf32, #tpu.memory_space<vmem>>, %arg16: memref<1x64x32xbf16, #tpu.memory_space<vmem>>, %arg17: memref<1x1x32xf32, #tpu.memory_space<vmem>>, %arg18: memref<1x32xf32, #tpu.memory_space<vmem>>, %arg19: memref<1x32xf32, #tpu.memory_space<vmem>>, %arg20: memref<32x128xf32, #tpu.memory_space<vmem>>, %arg21: memref<1x128xf32, #tpu.memory_space<vmem>>, %arg22: memref<1x1x128xf32, #tpu.memory_space<vmem>>, %arg23: memref<1x24x32xf32, #tpu.memory_space<vmem>>, %arg24: memref<24x64xf32, #tpu.memory_space<vmem>>) attributes {dimension_semantics = [#tpu.dimension_semantics<parallel>, #tpu.dimension_semantics<arbitrary>], iteration_bounds = array<i64: 2, 2>, scalar_prefetch = 0 : i64, scratch_operands = 2 : i64, tpu.core_type = #tpu.core_type<tc>, window_params = [{transform_indices = @transform_0, window_bounds = array<i64: 1, 24, 48>}, {pipeline_mode = #tpu.pipeline_mode<synchronous>, transform_indices = @transform_1, window_bounds = array<i64: 48, 32>}, {pipeline_mode = #tpu.pipeline_mode<synchronous>, transform_indices = @transform_2, window_bounds = array<i64: 1, 32>}, {pipeline_mode = #tpu.pipeline_mode<synchronous>, transform_indices = @transform_3, window_bounds = array<i64: 1, 1, 32>}, {pipeline_mode = #tpu.pipeline_mode<synchronous>, transform_indices = @transform_4, window_bounds = array<i64: 1, 24, 32>}, {transform_indices = @transform_5, window_bounds = array<i64: 1, 1, 32>}, {transform_indices = @transform_6, window_bounds = array<i64: 1, 1, 32>}, {transform_indices = @transform_7, window_bounds = array<i64: 1, 32, 192>}, {transform_indices = @transform_8, window_bounds = array<i64: 1, 64, 32>}, {transform_indices = @transform_9, window_bounds = array<i64: 1, 1, 32>}, {transform_indices = @transform_10, window_bounds = array<i64: 1, 1, 32>}, {transform_indices = @transform_11, window_bounds = array<i64: 1, 1, 32>}, {transform_indices = @transform_12, window_bounds = array<i64: 1, 32, 64>}, {transform_indices = @transform_13, window_bounds = array<i64: 1, 1, 64>}, {transform_indices = @transform_14, window_bounds = array<i64: 1, 64, 32>}, {transform_indices = @transform_15, window_bounds = array<i64: 1, 1, 32>}, {pipeline_mode = #tpu.pipeline_mode<synchronous>, transform_indices = @transform_16, window_bounds = array<i64: 1, 32>}, {pipeline_mode = #tpu.pipeline_mode<synchronous>, transform_indices = @transform_17, window_bounds = array<i64: 1, 32>}, {pipeline_mode = #tpu.pipeline_mode<synchronous>, transform_indices = @transform_18, window_bounds = array<i64: 32, 128>}, {pipeline_mode = #tpu.pipeline_mode<synchronous>, transform_indices = @transform_19, window_bounds = array<i64: 1, 128>}, {transform_indices = @transform_20, window_bounds = array<i64: 1, 1, 128>}]} {
    %c0_i32 = arith.constant 0 : i32
    %0 = arith.cmpi eq, %arg1, %c0_i32 : i32
    %1 = arith.extui %0 : i1 to i32
    %c0_i32_0 = arith.constant 0 : i32
    %2 = arith.cmpi ne, %1, %c0_i32_0 : i32
    scf.if %2 {
      %c0_83 = arith.constant 0 : index
      %c0_84 = arith.constant 0 : index
      %c0_85 = arith.constant 0 : index
      %212 = vector.load %arg2[%c0_83, %c0_84, %c0_85] : memref<1x24x48xf32, #tpu.memory_space<vmem>>, vector<1x24x48xf32>
      %213 = vector.shape_cast %212 : vector<1x24x48xf32> to vector<24x48xf32>
      %c0_86 = arith.constant 0 : index
      %c0_87 = arith.constant 0 : index
      %214 = vector.load %arg3[%c0_86, %c0_87] : memref<48x32xf32, #tpu.memory_space<vmem>>, vector<48x32xf32>
      %cst_88 = arith.constant dense<0.000000e+00> : vector<24x32xf32>
      %215 = tpu.matmul %213, %214, %cst_88 {dimension_numbers = #tpu.dot_dimension_numbers<[1], [0], [0], [1], [0, 0, 1, 1], [], []>} : vector<24x48xf32>, vector<48x32xf32>, vector<24x32xf32> -> vector<24x32xf32>
      %c0_89 = arith.constant 0 : index
      %c0_90 = arith.constant 0 : index
      %216 = vector.load %arg4[%c0_89, %c0_90] : memref<1x32xf32, #tpu.memory_space<vmem>>, vector<1x32xf32>
      %217 = vector.broadcast %216 : vector<1x32xf32> to vector<24x32xf32>
      %218 = arith.addf %215, %217 : vector<24x32xf32>
      %219 = vector.shape_cast %218 : vector<24x32xf32> to vector<1x24x32xf32>
      %220 = tpu.iota {dimensions = array<i32: 1>} : vector<1x24x32xi32>
      %c0_91 = arith.constant 0 : index
      %c0_92 = arith.constant 0 : index
      %c0_93 = arith.constant 0 : index
      %221 = vector.load %arg5[%c0_91, %c0_92, %c0_93] : memref<1x1x32xf32, #tpu.memory_space<vmem>>, vector<1x1x32xf32>
      %222 = vector.shape_cast %221 : vector<1x1x32xf32> to vector<1x1x32xf32>
      %223 = vector.broadcast %222 : vector<1x1x32xf32> to vector<1x24x32xf32>
      %c0_i32_94 = arith.constant 0 : i32
      %224 = vector.broadcast %c0_i32_94 : i32 to vector<1x24x32xi32>
      %225 = arith.cmpi eq, %220, %224 : vector<1x24x32xi32>
      %c17_i32_95 = arith.constant 17 : i32
      %226 = vector.broadcast %c17_i32_95 : i32 to vector<1x24x32xi32>
      %227 = arith.cmpi slt, %220, %226 : vector<1x24x32xi32>
      %cst_96 = arith.constant 0.000000e+00 : f32
      %228 = vector.broadcast %cst_96 : f32 to vector<1x24x32xf32>
      %229 = arith.select %227, %219, %228 : vector<1x24x32xi1>, vector<1x24x32xf32>
      %230 = arith.select %225, %223, %229 : vector<1x24x32xi1>, vector<1x24x32xf32>
      %c0_97 = arith.constant 0 : index
      %c0_98 = arith.constant 0 : index
      %c0_99 = arith.constant 0 : index
      %231 = vector.load %arg6[%c0_97, %c0_98, %c0_99] : memref<1x24x32xf32, #tpu.memory_space<vmem>>, vector<1x24x32xf32>
      %232 = arith.addf %230, %231 : vector<1x24x32xf32>
      %c0_100 = arith.constant 0 : index
      %c0_101 = arith.constant 0 : index
      %c0_102 = arith.constant 0 : index
      %233 = vector.load %arg23[%c0_100, %c0_101, %c0_102] : memref<1x24x32xf32, #tpu.memory_space<vmem>>, vector<1x24x32xf32>
      tpu.vector_store %arg23[%c0_100, %c0_101, %c0_102], %232 {strides = array<i32>} : memref<1x24x32xf32, #tpu.memory_space<vmem>>, vector<1x24x32xf32>,
    } else {
    }
    %c0 = arith.constant 0 : index
    %c0_1 = arith.constant 0 : index
    %c0_2 = arith.constant 0 : index
    %3 = vector.load %arg23[%c0, %c0_1, %c0_2] : memref<1x24x32xf32, #tpu.memory_space<vmem>>, vector<1x24x32xf32>
    %4 = vector.shape_cast %3 : vector<1x24x32xf32> to vector<24x32xf32>
    %c0_3 = arith.constant 0 : index
    %c0_4 = arith.constant 0 : index
    %c0_5 = arith.constant 0 : index
    %5 = vector.load %arg7[%c0_3, %c0_4, %c0_5] : memref<1x1x32xf32, #tpu.memory_space<vmem>>, vector<1x1x32xf32>
    %6 = vector.shape_cast %5 : vector<1x1x32xf32> to vector<1x32xf32>
    %c0_6 = arith.constant 0 : index
    %c0_7 = arith.constant 0 : index
    %c0_8 = arith.constant 0 : index
    %7 = vector.load %arg8[%c0_6, %c0_7, %c0_8] : memref<1x1x32xf32, #tpu.memory_space<vmem>>, vector<1x1x32xf32>
    %8 = vector.shape_cast %7 : vector<1x1x32xf32> to vector<1x32xf32>
    %cst = arith.constant dense<0.000000e+00> : vector<24xf32>
    %9 = vector.multi_reduction <add>, %4, %cst [1] : vector<24x32xf32> to vector<24xf32>
    %10 = vector.shape_cast %9 : vector<24xf32> to vector<24x1xf32>
    %cst_9 = arith.constant 3.200000e+01 : f32
    %11 = vector.broadcast %cst_9 : f32 to vector<24x1xf32>
    %12 = arith.divf %10, %11 : vector<24x1xf32>
    %13 = vector.broadcast %12 : vector<24x1xf32> to vector<24x32xf32>
    %14 = arith.subf %4, %13 : vector<24x32xf32>
    %15 = arith.mulf %14, %14 : vector<24x32xf32>
    %cst_10 = arith.constant dense<0.000000e+00> : vector<24xf32>
    %16 = vector.multi_reduction <add>, %15, %cst_10 [1] : vector<24x32xf32> to vector<24xf32>
    %17 = vector.shape_cast %16 : vector<24xf32> to vector<24x1xf32>
    %cst_11 = arith.constant 3.200000e+01 : f32
    %18 = vector.broadcast %cst_11 : f32 to vector<24x1xf32>
    %19 = arith.divf %17, %18 : vector<24x1xf32>
    %20 = vector.broadcast %12 : vector<24x1xf32> to vector<24x32xf32>
    %21 = arith.subf %4, %20 : vector<24x32xf32>
    %cst_12 = arith.constant 9.99999974E-6 : f32
    %22 = vector.broadcast %cst_12 : f32 to vector<24x1xf32>
    %23 = arith.addf %19, %22 : vector<24x1xf32>
    %24 = math.rsqrt %23 : vector<24x1xf32>
    %25 = vector.broadcast %24 : vector<24x1xf32> to vector<24x32xf32>
    %26 = arith.mulf %21, %25 : vector<24x32xf32>
    %27 = vector.broadcast %6 : vector<1x32xf32> to vector<24x32xf32>
    %28 = arith.mulf %26, %27 : vector<24x32xf32>
    %29 = vector.broadcast %8 : vector<1x32xf32> to vector<24x32xf32>
    %30 = arith.addf %28, %29 : vector<24x32xf32>
    %31 = arith.truncf %30 : vector<24x32xf32> to vector<24x32xbf16>
    %c0_13 = arith.constant 0 : index
    %c0_14 = arith.constant 0 : index
    %c0_15 = arith.constant 0 : index
    %32 = vector.load %arg9[%c0_13, %c0_14, %c0_15] : memref<1x32x192xbf16, #tpu.memory_space<vmem>>, vector<1x32x192xbf16>
    %33 = vector.shape_cast %32 : vector<1x32x192xbf16> to vector<32x192xbf16>
    %cst_16 = arith.constant dense<0.000000e+00> : vector<24x192xf32>
    %34 = tpu.matmul %31, %33, %cst_16 {dimension_numbers = #tpu.dot_dimension_numbers<[1], [0], [0], [1], [0, 0, 1, 1], [], []>} : vector<24x32xbf16>, vector<32x192xbf16>, vector<24x192xf32> -> vector<24x192xf32>
    %35 = vector.extract_strided_slice %34 {offsets = [0, 0], sizes = [24, 64], strides = [1, 1]} : vector<24x192xf32> to vector<24x64xf32>
    %cst_17 = arith.constant 2.500000e-01 : f32
    %36 = vector.broadcast %cst_17 : f32 to vector<24x64xf32>
    %37 = arith.mulf %35, %36 : vector<24x64xf32>
    %38 = vector.shape_cast %37 : vector<24x64xf32> to vector<1x24x64xf32>
    %39 = vector.extract_strided_slice %34 {offsets = [0, 64], sizes = [24, 64], strides = [1, 1]} : vector<24x192xf32> to vector<24x64xf32>
    %40 = vector.shape_cast %39 : vector<24x64xf32> to vector<1x24x64xf32>
    %41 = vector.extract_strided_slice %34 {offsets = [0, 128], sizes = [24, 64], strides = [1, 1]} : vector<24x192xf32> to vector<24x64xf32>
    %42 = vector.shape_cast %41 : vector<24x64xf32> to vector<1x24x64xf32>
    %43 = tpu.iota {dimensions = array<i32: 2>} : vector<1x1x24xi32>
    %c17_i32 = arith.constant 17 : i32
    %44 = vector.broadcast %c17_i32 : i32 to vector<1x1x24xi32>
    %45 = arith.cmpi slt, %43, %44 : vector<1x1x24xi32>
    %cst_18 = arith.constant 0.000000e+00 : f32
    %cst_19 = arith.constant -1.000000e+30 : f32
    %46 = vector.broadcast %cst_18 : f32 to vector<1x1x24xf32>
    %47 = vector.broadcast %cst_19 : f32 to vector<1x1x24xf32>
    %48 = arith.select %45, %46, %47 : vector<1x1x24xi1>, vector<1x1x24xf32>
    %49 = vector.extract_strided_slice %38 {offsets = [0, 0, 0], sizes = [1, 24, 16], strides = [1, 1, 1]} : vector<1x24x64xf32> to vector<1x24x16xf32>
    %50 = arith.truncf %49 : vector<1x24x16xf32> to vector<1x24x16xbf16>
    %51 = vector.extract_strided_slice %40 {offsets = [0, 0, 0], sizes = [1, 24, 16], strides = [1, 1, 1]} : vector<1x24x64xf32> to vector<1x24x16xf32>
    %52 = arith.truncf %51 : vector<1x24x16xf32> to vector<1x24x16xbf16>
    %53 = vector.extract_strided_slice %42 {offsets = [0, 0, 0], sizes = [1, 24, 16], strides = [1, 1, 1]} : vector<1x24x64xf32> to vector<1x24x16xf32>
    %54 = arith.truncf %53 : vector<1x24x16xf32> to vector<1x24x16xbf16>
    "tpu.trace_start"() <{level = 10 : i32, message = "bnd,bmd->bnm"}> : () -> ()
    %cst_20 = arith.constant dense<0.000000e+00> : vector<1x24x24xf32>
    %55 = tpu.matmul %50, %52, %cst_20 {dimension_numbers = #tpu.dot_dimension_numbers<[2], [2], [1], [1], [0, 0, 0, 1, 1, 1], [0], [0]>} : vector<1x24x16xbf16>, vector<1x24x16xbf16>, vector<1x24x24xf32> -> vector<1x24x24xf32>
    "tpu.trace_stop"() : () -> ()
    %56 = vector.broadcast %48 : vector<1x1x24xf32> to vector<1x24x24xf32>
    %57 = arith.addf %55, %56 : vector<1x24x24xf32>
    %cst_21 = arith.constant dense<0xFF800000> : vector<1x24xf32>
    %58 = vector.multi_reduction <maximumf>, %57, %cst_21 [2] : vector<1x24x24xf32> to vector<1x24xf32>
    %59 = vector.shape_cast %58 : vector<1x24xf32> to vector<1x24x1xf32>
    %60 = vector.broadcast %59 : vector<1x24x1xf32> to vector<1x24x24xf32>
    %61 = arith.subf %57, %60 : vector<1x24x24xf32>
    %62 = math.exp %61 : vector<1x24x24xf32>
    %cst_22 = arith.constant dense<0.000000e+00> : vector<1x24xf32>
    %63 = vector.multi_reduction <add>, %62, %cst_22 [2] : vector<1x24x24xf32> to vector<1x24xf32>
    %64 = vector.shape_cast %63 : vector<1x24xf32> to vector<1x24x1xf32>
    %65 = tpu.reciprocal %64 {approx = true} : vector<1x24x1xf32> -> vector<1x24x1xf32>
    %66 = vector.broadcast %65 : vector<1x24x1xf32> to vector<1x24x24xf32>
    %67 = arith.mulf %62, %66 : vector<1x24x24xf32>
    %68 = arith.truncf %67 : vector<1x24x24xf32> to vector<1x24x24xbf16>
    "tpu.trace_start"() <{level = 10 : i32, message = "bnm,bmd->bnd"}> : () -> ()
    %cst_23 = arith.constant dense<0.000000e+00> : vector<1x24x16xf32>
    %69 = tpu.matmul %68, %54, %cst_23 {dimension_numbers = #tpu.dot_dimension_numbers<[2], [1], [1], [2], [0, 0, 0, 1, 1, 2], [0], [0]>} : vector<1x24x24xbf16>, vector<1x24x16xbf16>, vector<1x24x16xf32> -> vector<1x24x16xf32>
    "tpu.trace_stop"() : () -> ()
    %70 = vector.shape_cast %69 : vector<1x24x16xf32> to vector<24x16xf32>
    %c0_24 = arith.constant 0 : index
    %c0_25 = arith.constant 0 : index
    %71 = vector.load %arg24[%c0_24, %c0_25] : memref<24x64xf32, #tpu.memory_space<vmem>>, vector<24x16xf32>
    tpu.vector_store %arg24[%c0_24, %c0_25], %70 {strides = array<i32>} : memref<24x64xf32, #tpu.memory_space<vmem>>, vector<24x16xf32>,
    %72 = vector.extract_strided_slice %38 {offsets = [0, 0, 16], sizes = [1, 24, 16], strides = [1, 1, 1]} : vector<1x24x64xf32> to vector<1x24x16xf32>
    %73 = arith.truncf %72 : vector<1x24x16xf32> to vector<1x24x16xbf16>
    %74 = vector.extract_strided_slice %40 {offsets = [0, 0, 16], sizes = [1, 24, 16], strides = [1, 1, 1]} : vector<1x24x64xf32> to vector<1x24x16xf32>
    %75 = arith.truncf %74 : vector<1x24x16xf32> to vector<1x24x16xbf16>
    %76 = vector.extract_strided_slice %42 {offsets = [0, 0, 16], sizes = [1, 24, 16], strides = [1, 1, 1]} : vector<1x24x64xf32> to vector<1x24x16xf32>
    %77 = arith.truncf %76 : vector<1x24x16xf32> to vector<1x24x16xbf16>
    "tpu.trace_start"() <{level = 10 : i32, message = "bnd,bmd->bnm"}> : () -> ()
    %cst_26 = arith.constant dense<0.000000e+00> : vector<1x24x24xf32>
    %78 = tpu.matmul %73, %75, %cst_26 {dimension_numbers = #tpu.dot_dimension_numbers<[2], [2], [1], [1], [0, 0, 0, 1, 1, 1], [0], [0]>} : vector<1x24x16xbf16>, vector<1x24x16xbf16>, vector<1x24x24xf32> -> vector<1x24x24xf32>
    "tpu.trace_stop"() : () -> ()
    %79 = vector.broadcast %48 : vector<1x1x24xf32> to vector<1x24x24xf32>
    %80 = arith.addf %78, %79 : vector<1x24x24xf32>
    %cst_27 = arith.constant dense<0xFF800000> : vector<1x24xf32>
    %81 = vector.multi_reduction <maximumf>, %80, %cst_27 [2] : vector<1x24x24xf32> to vector<1x24xf32>
    %82 = vector.shape_cast %81 : vector<1x24xf32> to vector<1x24x1xf32>
    %83 = vector.broadcast %82 : vector<1x24x1xf32> to vector<1x24x24xf32>
    %84 = arith.subf %80, %83 : vector<1x24x24xf32>
    %85 = math.exp %84 : vector<1x24x24xf32>
    %cst_28 = arith.constant dense<0.000000e+00> : vector<1x24xf32>
    %86 = vector.multi_reduction <add>, %85, %cst_28 [2] : vector<1x24x24xf32> to vector<1x24xf32>
    %87 = vector.shape_cast %86 : vector<1x24xf32> to vector<1x24x1xf32>
    %88 = tpu.reciprocal %87 {approx = true} : vector<1x24x1xf32> -> vector<1x24x1xf32>
    %89 = vector.broadcast %88 : vector<1x24x1xf32> to vector<1x24x24xf32>
    %90 = arith.mulf %85, %89 : vector<1x24x24xf32>
    %91 = arith.truncf %90 : vector<1x24x24xf32> to vector<1x24x24xbf16>
    "tpu.trace_start"() <{level = 10 : i32, message = "bnm,bmd->bnd"}> : () -> ()
    %cst_29 = arith.constant dense<0.000000e+00> : vector<1x24x16xf32>
    %92 = tpu.matmul %91, %77, %cst_29 {dimension_numbers = #tpu.dot_dimension_numbers<[2], [1], [1], [2], [0, 0, 0, 1, 1, 2], [0], [0]>} : vector<1x24x24xbf16>, vector<1x24x16xbf16>, vector<1x24x16xf32> -> vector<1x24x16xf32>
    "tpu.trace_stop"() : () -> ()
    %93 = vector.shape_cast %92 : vector<1x24x16xf32> to vector<24x16xf32>
    %c0_30 = arith.constant 0 : index
    %c16 = arith.constant 16 : index
    %94 = vector.load %arg24[%c0_30, %c16] : memref<24x64xf32, #tpu.memory_space<vmem>>, vector<24x16xf32>
    tpu.vector_store %arg24[%c0_30, %c16], %93 {strides = array<i32>} : memref<24x64xf32, #tpu.memory_space<vmem>>, vector<24x16xf32>,
    %95 = vector.extract_strided_slice %38 {offsets = [0, 0, 32], sizes = [1, 24, 16], strides = [1, 1, 1]} : vector<1x24x64xf32> to vector<1x24x16xf32>
    %96 = arith.truncf %95 : vector<1x24x16xf32> to vector<1x24x16xbf16>
    %97 = vector.extract_strided_slice %40 {offsets = [0, 0, 32], sizes = [1, 24, 16], strides = [1, 1, 1]} : vector<1x24x64xf32> to vector<1x24x16xf32>
    %98 = arith.truncf %97 : vector<1x24x16xf32> to vector<1x24x16xbf16>
    %99 = vector.extract_strided_slice %42 {offsets = [0, 0, 32], sizes = [1, 24, 16], strides = [1, 1, 1]} : vector<1x24x64xf32> to vector<1x24x16xf32>
    %100 = arith.truncf %99 : vector<1x24x16xf32> to vector<1x24x16xbf16>
    "tpu.trace_start"() <{level = 10 : i32, message = "bnd,bmd->bnm"}> : () -> ()
    %cst_31 = arith.constant dense<0.000000e+00> : vector<1x24x24xf32>
    %101 = tpu.matmul %96, %98, %cst_31 {dimension_numbers = #tpu.dot_dimension_numbers<[2], [2], [1], [1], [0, 0, 0, 1, 1, 1], [0], [0]>} : vector<1x24x16xbf16>, vector<1x24x16xbf16>, vector<1x24x24xf32> -> vector<1x24x24xf32>
    "tpu.trace_stop"() : () -> ()
    %102 = vector.broadcast %48 : vector<1x1x24xf32> to vector<1x24x24xf32>
    %103 = arith.addf %101, %102 : vector<1x24x24xf32>
    %cst_32 = arith.constant dense<0xFF800000> : vector<1x24xf32>
    %104 = vector.multi_reduction <maximumf>, %103, %cst_32 [2] : vector<1x24x24xf32> to vector<1x24xf32>
    %105 = vector.shape_cast %104 : vector<1x24xf32> to vector<1x24x1xf32>
    %106 = vector.broadcast %105 : vector<1x24x1xf32> to vector<1x24x24xf32>
    %107 = arith.subf %103, %106 : vector<1x24x24xf32>
    %108 = math.exp %107 : vector<1x24x24xf32>
    %cst_33 = arith.constant dense<0.000000e+00> : vector<1x24xf32>
    %109 = vector.multi_reduction <add>, %108, %cst_33 [2] : vector<1x24x24xf32> to vector<1x24xf32>
    %110 = vector.shape_cast %109 : vector<1x24xf32> to vector<1x24x1xf32>
    %111 = tpu.reciprocal %110 {approx = true} : vector<1x24x1xf32> -> vector<1x24x1xf32>
    %112 = vector.broadcast %111 : vector<1x24x1xf32> to vector<1x24x24xf32>
    %113 = arith.mulf %108, %112 : vector<1x24x24xf32>
    %114 = arith.truncf %113 : vector<1x24x24xf32> to vector<1x24x24xbf16>
    "tpu.trace_start"() <{level = 10 : i32, message = "bnm,bmd->bnd"}> : () -> ()
    %cst_34 = arith.constant dense<0.000000e+00> : vector<1x24x16xf32>
    %115 = tpu.matmul %114, %100, %cst_34 {dimension_numbers = #tpu.dot_dimension_numbers<[2], [1], [1], [2], [0, 0, 0, 1, 1, 2], [0], [0]>} : vector<1x24x24xbf16>, vector<1x24x16xbf16>, vector<1x24x16xf32> -> vector<1x24x16xf32>
    "tpu.trace_stop"() : () -> ()
    %116 = vector.shape_cast %115 : vector<1x24x16xf32> to vector<24x16xf32>
    %c0_35 = arith.constant 0 : index
    %c32 = arith.constant 32 : index
    %117 = vector.load %arg24[%c0_35, %c32] : memref<24x64xf32, #tpu.memory_space<vmem>>, vector<24x16xf32>
    tpu.vector_store %arg24[%c0_35, %c32], %116 {strides = array<i32>} : memref<24x64xf32, #tpu.memory_space<vmem>>, vector<24x16xf32>,
    %118 = vector.extract_strided_slice %38 {offsets = [0, 0, 48], sizes = [1, 24, 16], strides = [1, 1, 1]} : vector<1x24x64xf32> to vector<1x24x16xf32>
    %119 = arith.truncf %118 : vector<1x24x16xf32> to vector<1x24x16xbf16>
    %120 = vector.extract_strided_slice %40 {offsets = [0, 0, 48], sizes = [1, 24, 16], strides = [1, 1, 1]} : vector<1x24x64xf32> to vector<1x24x16xf32>
    %121 = arith.truncf %120 : vector<1x24x16xf32> to vector<1x24x16xbf16>
    %122 = vector.extract_strided_slice %42 {offsets = [0, 0, 48], sizes = [1, 24, 16], strides = [1, 1, 1]} : vector<1x24x64xf32> to vector<1x24x16xf32>
    %123 = arith.truncf %122 : vector<1x24x16xf32> to vector<1x24x16xbf16>
    "tpu.trace_start"() <{level = 10 : i32, message = "bnd,bmd->bnm"}> : () -> ()
    %cst_36 = arith.constant dense<0.000000e+00> : vector<1x24x24xf32>
    %124 = tpu.matmul %119, %121, %cst_36 {dimension_numbers = #tpu.dot_dimension_numbers<[2], [2], [1], [1], [0, 0, 0, 1, 1, 1], [0], [0]>} : vector<1x24x16xbf16>, vector<1x24x16xbf16>, vector<1x24x24xf32> -> vector<1x24x24xf32>
    "tpu.trace_stop"() : () -> ()
    %125 = vector.broadcast %48 : vector<1x1x24xf32> to vector<1x24x24xf32>
    %126 = arith.addf %124, %125 : vector<1x24x24xf32>
    %cst_37 = arith.constant dense<0xFF800000> : vector<1x24xf32>
    %127 = vector.multi_reduction <maximumf>, %126, %cst_37 [2] : vector<1x24x24xf32> to vector<1x24xf32>
    %128 = vector.shape_cast %127 : vector<1x24xf32> to vector<1x24x1xf32>
    %129 = vector.broadcast %128 : vector<1x24x1xf32> to vector<1x24x24xf32>
    %130 = arith.subf %126, %129 : vector<1x24x24xf32>
    %131 = math.exp %130 : vector<1x24x24xf32>
    %cst_38 = arith.constant dense<0.000000e+00> : vector<1x24xf32>
    %132 = vector.multi_reduction <add>, %131, %cst_38 [2] : vector<1x24x24xf32> to vector<1x24xf32>
    %133 = vector.shape_cast %132 : vector<1x24xf32> to vector<1x24x1xf32>
    %134 = tpu.reciprocal %133 {approx = true} : vector<1x24x1xf32> -> vector<1x24x1xf32>
    %135 = vector.broadcast %134 : vector<1x24x1xf32> to vector<1x24x24xf32>
    %136 = arith.mulf %131, %135 : vector<1x24x24xf32>
    %137 = arith.truncf %136 : vector<1x24x24xf32> to vector<1x24x24xbf16>
    "tpu.trace_start"() <{level = 10 : i32, message = "bnm,bmd->bnd"}> : () -> ()
    %cst_39 = arith.constant dense<0.000000e+00> : vector<1x24x16xf32>
    %138 = tpu.matmul %137, %123, %cst_39 {dimension_numbers = #tpu.dot_dimension_numbers<[2], [1], [1], [2], [0, 0, 0, 1, 1, 2], [0], [0]>} : vector<1x24x24xbf16>, vector<1x24x16xbf16>, vector<1x24x16xf32> -> vector<1x24x16xf32>
    "tpu.trace_stop"() : () -> ()
    %139 = vector.shape_cast %138 : vector<1x24x16xf32> to vector<24x16xf32>
    %c0_40 = arith.constant 0 : index
    %c48 = arith.constant 48 : index
    %140 = vector.load %arg24[%c0_40, %c48] : memref<24x64xf32, #tpu.memory_space<vmem>>, vector<24x16xf32>
    tpu.vector_store %arg24[%c0_40, %c48], %139 {strides = array<i32>} : memref<24x64xf32, #tpu.memory_space<vmem>>, vector<24x16xf32>,
    %c0_41 = arith.constant 0 : index
    %c0_42 = arith.constant 0 : index
    %141 = vector.load %arg24[%c0_41, %c0_42] : memref<24x64xf32, #tpu.memory_space<vmem>>, vector<24x64xf32>
    %142 = arith.truncf %141 : vector<24x64xf32> to vector<24x64xbf16>
    %c0_43 = arith.constant 0 : index
    %c0_44 = arith.constant 0 : index
    %c0_45 = arith.constant 0 : index
    %143 = vector.load %arg10[%c0_43, %c0_44, %c0_45] : memref<1x64x32xbf16, #tpu.memory_space<vmem>>, vector<1x64x32xbf16>
    %144 = vector.shape_cast %143 : vector<1x64x32xbf16> to vector<64x32xbf16>
    %cst_46 = arith.constant dense<0.000000e+00> : vector<24x32xf32>
    %145 = tpu.matmul %142, %144, %cst_46 {dimension_numbers = #tpu.dot_dimension_numbers<[1], [0], [0], [1], [0, 0, 1, 1], [], []>} : vector<24x64xbf16>, vector<64x32xbf16>, vector<24x32xf32> -> vector<24x32xf32>
    %146 = arith.addf %4, %145 : vector<24x32xf32>
    %c0_47 = arith.constant 0 : index
    %c0_48 = arith.constant 0 : index
    %c0_49 = arith.constant 0 : index
    %147 = vector.load %arg11[%c0_47, %c0_48, %c0_49] : memref<1x1x32xf32, #tpu.memory_space<vmem>>, vector<1x1x32xf32>
    %148 = vector.shape_cast %147 : vector<1x1x32xf32> to vector<1x32xf32>
    %149 = vector.broadcast %148 : vector<1x32xf32> to vector<24x32xf32>
    %150 = arith.addf %146, %149 : vector<24x32xf32>
    %c0_50 = arith.constant 0 : index
    %c0_51 = arith.constant 0 : index
    %c0_52 = arith.constant 0 : index
    %151 = vector.load %arg12[%c0_50, %c0_51, %c0_52] : memref<1x1x32xf32, #tpu.memory_space<vmem>>, vector<1x1x32xf32>
    %152 = vector.shape_cast %151 : vector<1x1x32xf32> to vector<1x32xf32>
    %c0_53 = arith.constant 0 : index
    %c0_54 = arith.constant 0 : index
    %c0_55 = arith.constant 0 : index
    %153 = vector.load %arg13[%c0_53, %c0_54, %c0_55] : memref<1x1x32xf32, #tpu.memory_space<vmem>>, vector<1x1x32xf32>
    %154 = vector.shape_cast %153 : vector<1x1x32xf32> to vector<1x32xf32>
    %cst_56 = arith.constant dense<0.000000e+00> : vector<24xf32>
    %155 = vector.multi_reduction <add>, %150, %cst_56 [1] : vector<24x32xf32> to vector<24xf32>
    %156 = vector.shape_cast %155 : vector<24xf32> to vector<24x1xf32>
    %cst_57 = arith.constant 3.200000e+01 : f32
    %157 = vector.broadcast %cst_57 : f32 to vector<24x1xf32>
    %158 = arith.divf %156, %157 : vector<24x1xf32>
    %159 = vector.broadcast %158 : vector<24x1xf32> to vector<24x32xf32>
    %160 = arith.subf %150, %159 : vector<24x32xf32>
    %161 = arith.mulf %160, %160 : vector<24x32xf32>
    %cst_58 = arith.constant dense<0.000000e+00> : vector<24xf32>
    %162 = vector.multi_reduction <add>, %161, %cst_58 [1] : vector<24x32xf32> to vector<24xf32>
    %163 = vector.shape_cast %162 : vector<24xf32> to vector<24x1xf32>
    %cst_59 = arith.constant 3.200000e+01 : f32
    %164 = vector.broadcast %cst_59 : f32 to vector<24x1xf32>
    %165 = arith.divf %163, %164 : vector<24x1xf32>
    %166 = vector.broadcast %158 : vector<24x1xf32> to vector<24x32xf32>
    %167 = arith.subf %150, %166 : vector<24x32xf32>
    %cst_60 = arith.constant 9.99999974E-6 : f32
    %168 = vector.broadcast %cst_60 : f32 to vector<24x1xf32>
    %169 = arith.addf %165, %168 : vector<24x1xf32>
    %170 = math.rsqrt %169 : vector<24x1xf32>
    %171 = vector.broadcast %170 : vector<24x1xf32> to vector<24x32xf32>
    %172 = arith.mulf %167, %171 : vector<24x32xf32>
    %173 = vector.broadcast %152 : vector<1x32xf32> to vector<24x32xf32>
    %174 = arith.mulf %172, %173 : vector<24x32xf32>
    %175 = vector.broadcast %154 : vector<1x32xf32> to vector<24x32xf32>
    %176 = arith.addf %174, %175 : vector<24x32xf32>
    %177 = arith.truncf %176 : vector<24x32xf32> to vector<24x32xbf16>
    %c0_61 = arith.constant 0 : index
    %c0_62 = arith.constant 0 : index
    %c0_63 = arith.constant 0 : index
    %178 = vector.load %arg14[%c0_61, %c0_62, %c0_63] : memref<1x32x64xbf16, #tpu.memory_space<vmem>>, vector<1x32x64xbf16>
    %179 = vector.shape_cast %178 : vector<1x32x64xbf16> to vector<32x64xbf16>
    %cst_64 = arith.constant dense<0.000000e+00> : vector<24x64xf32>
    %180 = tpu.matmul %177, %179, %cst_64 {dimension_numbers = #tpu.dot_dimension_numbers<[1], [0], [0], [1], [0, 0, 1, 1], [], []>} : vector<24x32xbf16>, vector<32x64xbf16>, vector<24x64xf32> -> vector<24x64xf32>
    %c0_65 = arith.constant 0 : index
    %c0_66 = arith.constant 0 : index
    %c0_67 = arith.constant 0 : index
    %181 = vector.load %arg15[%c0_65, %c0_66, %c0_67] : memref<1x1x64xf32, #tpu.memory_space<vmem>>, vector<1x1x64xf32>
    %182 = vector.shape_cast %181 : vector<1x1x64xf32> to vector<1x64xf32>
    %183 = vector.broadcast %182 : vector<1x64xf32> to vector<24x64xf32>
    %184 = arith.addf %180, %183 : vector<24x64xf32>
    %185 = arith.mulf %184, %184 : vector<24x64xf32>
    %186 = arith.mulf %184, %185 : vector<24x64xf32>
    %cst_68 = arith.constant 4.471500e-02 : f32
    %187 = vector.broadcast %cst_68 : f32 to vector<24x64xf32>
    %188 = arith.mulf %187, %186 : vector<24x64xf32>
    %189 = arith.addf %184, %188 : vector<24x64xf32>
    %cst_69 = arith.constant 0.797884583 : f32
    %190 = vector.broadcast %cst_69 : f32 to vector<24x64xf32>
    %191 = arith.mulf %190, %189 : vector<24x64xf32>
    %192 = math.tanh %191 : vector<24x64xf32>
    %cst_70 = arith.constant 1.000000e+00 : f32
    %193 = vector.broadcast %cst_70 : f32 to vector<24x64xf32>
    %194 = arith.addf %193, %192 : vector<24x64xf32>
    %cst_71 = arith.constant 5.000000e-01 : f32
    %195 = vector.broadcast %cst_71 : f32 to vector<24x64xf32>
    %196 = arith.mulf %195, %194 : vector<24x64xf32>
    %197 = arith.mulf %184, %196 : vector<24x64xf32>
    %198 = arith.truncf %197 : vector<24x64xf32> to vector<24x64xbf16>
    %c0_72 = arith.constant 0 : index
    %c0_73 = arith.constant 0 : index
    %c0_74 = arith.constant 0 : index
    %199 = vector.load %arg16[%c0_72, %c0_73, %c0_74] : memref<1x64x32xbf16, #tpu.memory_space<vmem>>, vector<1x64x32xbf16>
    %200 = vector.shape_cast %199 : vector<1x64x32xbf16> to vector<64x32xbf16>
    %cst_75 = arith.constant dense<0.000000e+00> : vector<24x32xf32>
    %201 = tpu.matmul %198, %200, %cst_75 {dimension_numbers = #tpu.dot_dimension_numbers<[1], [0], [0], [1], [0, 0, 1, 1], [], []>} : vector<24x64xbf16>, vector<64x32xbf16>, vector<24x32xf32> -> vector<24x32xf32>
    %202 = arith.addf %150, %201 : vector<24x32xf32>
    %c0_76 = arith.constant 0 : index
    %c0_77 = arith.constant 0 : index
    %c0_78 = arith.constant 0 : index
    %203 = vector.load %arg17[%c0_76, %c0_77, %c0_78] : memref<1x1x32xf32, #tpu.memory_space<vmem>>, vector<1x1x32xf32>
    %204 = vector.shape_cast %203 : vector<1x1x32xf32> to vector<1x32xf32>
    %205 = vector.broadcast %204 : vector<1x32xf32> to vector<24x32xf32>
    %206 = arith.addf %202, %205 : vector<24x32xf32>
    %207 = vector.shape_cast %206 : vector<24x32xf32> to vector<1x24x32xf32>
    %c0_79 = arith.constant 0 : index
    %c0_80 = arith.constant 0 : index
    %c0_81 = arith.constant 0 : index
    %208 = vector.load %arg23[%c0_79, %c0_80, %c0_81] : memref<1x24x32xf32, #tpu.memory_space<vmem>>, vector<1x24x32xf32>
    tpu.vector_store %arg23[%c0_79, %c0_80, %c0_81], %207 {strides = array<i32>} : memref<1x24x32xf32, #tpu.memory_space<vmem>>, vector<1x24x32xf32>,
    %c1_i32 = arith.constant 1 : i32
    %209 = arith.cmpi eq, %arg1, %c1_i32 : i32
    %210 = arith.extui %209 : i1 to i32
    %c0_i32_82 = arith.constant 0 : i32
    %211 = arith.cmpi ne, %210, %c0_i32_82 : i32
    scf.if %211 {
      %212 = vector.shape_cast %206 : vector<24x32xf32> to vector<1x24x32xf32>
      %213 = vector.extract_strided_slice %212 {offsets = [0, 0, 0], sizes = [1, 1, 32], strides = [1, 1, 1]} : vector<1x24x32xf32> to vector<1x1x32xf32>
      %214 = vector.shape_cast %213 : vector<1x1x32xf32> to vector<1x32xf32>
      %c0_83 = arith.constant 0 : index
      %c0_84 = arith.constant 0 : index
      %215 = vector.load %arg18[%c0_83, %c0_84] : memref<1x32xf32, #tpu.memory_space<vmem>>, vector<1x32xf32>
      %c0_85 = arith.constant 0 : index
      %c0_86 = arith.constant 0 : index
      %216 = vector.load %arg19[%c0_85, %c0_86] : memref<1x32xf32, #tpu.memory_space<vmem>>, vector<1x32xf32>
      %cst_87 = arith.constant dense<0.000000e+00> : vector<1xf32>
      %217 = vector.multi_reduction <add>, %214, %cst_87 [1] : vector<1x32xf32> to vector<1xf32>
      %218 = vector.shape_cast %217 : vector<1xf32> to vector<1x1xf32>
      %cst_88 = arith.constant 3.200000e+01 : f32
      %219 = vector.broadcast %cst_88 : f32 to vector<1x1xf32>
      %220 = arith.divf %218, %219 : vector<1x1xf32>
      %221 = vector.broadcast %220 : vector<1x1xf32> to vector<1x32xf32>
      %222 = arith.subf %214, %221 : vector<1x32xf32>
      %223 = arith.mulf %222, %222 : vector<1x32xf32>
      %cst_89 = arith.constant dense<0.000000e+00> : vector<1xf32>
      %224 = vector.multi_reduction <add>, %223, %cst_89 [1] : vector<1x32xf32> to vector<1xf32>
      %225 = vector.shape_cast %224 : vector<1xf32> to vector<1x1xf32>
      %cst_90 = arith.constant 3.200000e+01 : f32
      %226 = vector.broadcast %cst_90 : f32 to vector<1x1xf32>
      %227 = arith.divf %225, %226 : vector<1x1xf32>
      %228 = vector.broadcast %220 : vector<1x1xf32> to vector<1x32xf32>
      %229 = arith.subf %214, %228 : vector<1x32xf32>
      %cst_91 = arith.constant 9.99999974E-6 : f32
      %230 = vector.broadcast %cst_91 : f32 to vector<1x1xf32>
      %231 = arith.addf %227, %230 : vector<1x1xf32>
      %232 = math.rsqrt %231 : vector<1x1xf32>
      %233 = vector.broadcast %232 : vector<1x1xf32> to vector<1x32xf32>
      %234 = arith.mulf %229, %233 : vector<1x32xf32>
      %235 = arith.mulf %234, %215 : vector<1x32xf32>
      %236 = arith.addf %235, %216 : vector<1x32xf32>
      %c0_92 = arith.constant 0 : index
      %c0_93 = arith.constant 0 : index
      %237 = vector.load %arg20[%c0_92, %c0_93] : memref<32x128xf32, #tpu.memory_space<vmem>>, vector<32x128xf32>
      %cst_94 = arith.constant dense<0.000000e+00> : vector<1x128xf32>
      %238 = tpu.matmul %236, %237, %cst_94 {dimension_numbers = #tpu.dot_dimension_numbers<[1], [0], [0], [1], [0, 0, 1, 1], [], []>} : vector<1x32xf32>, vector<32x128xf32>, vector<1x128xf32> -> vector<1x128xf32>
      %c0_95 = arith.constant 0 : index
      %c0_96 = arith.constant 0 : index
      %239 = vector.load %arg21[%c0_95, %c0_96] : memref<1x128xf32, #tpu.memory_space<vmem>>, vector<1x128xf32>
      %240 = arith.addf %238, %239 : vector<1x128xf32>
      %241 = vector.shape_cast %240 : vector<1x128xf32> to vector<1x1x128xf32>
      %c0_97 = arith.constant 0 : index
      %c0_98 = arith.constant 0 : index
      %c0_99 = arith.constant 0 : index
      %242 = vector.load %arg22[%c0_97, %c0_98, %c0_99] : memref<1x1x128xf32, #tpu.memory_space<vmem>>, vector<1x1x128xf32>
      tpu.vector_store %arg22[%c0_97, %c0_98, %c0_99], %241 {strides = array<i32>} : memref<1x1x128xf32, #tpu.memory_space<vmem>>, vector<1x1x128xf32>,
    } else {
    }
    return
  }
  func.func @transform_0(%arg0: i32, %arg1: i32) -> (i32, i32, i32) {
    %c0_i32 = arith.constant 0 : i32
    %c0_i32_0 = arith.constant 0 : i32
    %c0_i32_1 = arith.constant 0 : i32
    return %arg0, %c0_i32, %c0_i32_0 : i32, i32, i32
  }
  func.func @transform_1(%arg0: i32, %arg1: i32) -> (i32, i32) {
    %c0_i32 = arith.constant 0 : i32
    %c0_i32_0 = arith.constant 0 : i32
    %c0_i32_1 = arith.constant 0 : i32
    return %c0_i32, %c0_i32_0 : i32, i32
  }
  func.func @transform_2(%arg0: i32, %arg1: i32) -> (i32, i32) {
    %c0_i32 = arith.constant 0 : i32
    %c0_i32_0 = arith.constant 0 : i32
    %c0_i32_1 = arith.constant 0 : i32
    return %c0_i32, %c0_i32_0 : i32, i32
  }
  func.func @transform_3(%arg0: i32, %arg1: i32) -> (i32, i32, i32) {
    %c0_i32 = arith.constant 0 : i32
    %c0_i32_0 = arith.constant 0 : i32
    %c0_i32_1 = arith.constant 0 : i32
    %c0_i32_2 = arith.constant 0 : i32
    return %c0_i32, %c0_i32_0, %c0_i32_1 : i32, i32, i32
  }
  func.func @transform_4(%arg0: i32, %arg1: i32) -> (i32, i32, i32) {
    %c0_i32 = arith.constant 0 : i32
    %c0_i32_0 = arith.constant 0 : i32
    %c0_i32_1 = arith.constant 0 : i32
    %c0_i32_2 = arith.constant 0 : i32
    return %c0_i32, %c0_i32_0, %c0_i32_1 : i32, i32, i32
  }
  func.func @transform_5(%arg0: i32, %arg1: i32) -> (i32, i32, i32) {
    %c0_i32 = arith.constant 0 : i32
    %c0_i32_0 = arith.constant 0 : i32
    %c0_i32_1 = arith.constant 0 : i32
    return %arg1, %c0_i32, %c0_i32_0 : i32, i32, i32
  }
  func.func @transform_6(%arg0: i32, %arg1: i32) -> (i32, i32, i32) {
    %c0_i32 = arith.constant 0 : i32
    %c0_i32_0 = arith.constant 0 : i32
    %c0_i32_1 = arith.constant 0 : i32
    return %arg1, %c0_i32, %c0_i32_0 : i32, i32, i32
  }
  func.func @transform_7(%arg0: i32, %arg1: i32) -> (i32, i32, i32) {
    %c0_i32 = arith.constant 0 : i32
    %c0_i32_0 = arith.constant 0 : i32
    %c0_i32_1 = arith.constant 0 : i32
    return %arg1, %c0_i32, %c0_i32_0 : i32, i32, i32
  }
  func.func @transform_8(%arg0: i32, %arg1: i32) -> (i32, i32, i32) {
    %c0_i32 = arith.constant 0 : i32
    %c0_i32_0 = arith.constant 0 : i32
    %c0_i32_1 = arith.constant 0 : i32
    return %arg1, %c0_i32, %c0_i32_0 : i32, i32, i32
  }
  func.func @transform_9(%arg0: i32, %arg1: i32) -> (i32, i32, i32) {
    %c0_i32 = arith.constant 0 : i32
    %c0_i32_0 = arith.constant 0 : i32
    %c0_i32_1 = arith.constant 0 : i32
    return %arg1, %c0_i32, %c0_i32_0 : i32, i32, i32
  }
  func.func @transform_10(%arg0: i32, %arg1: i32) -> (i32, i32, i32) {
    %c0_i32 = arith.constant 0 : i32
    %c0_i32_0 = arith.constant 0 : i32
    %c0_i32_1 = arith.constant 0 : i32
    return %arg1, %c0_i32, %c0_i32_0 : i32, i32, i32
  }
  func.func @transform_11(%arg0: i32, %arg1: i32) -> (i32, i32, i32) {
    %c0_i32 = arith.constant 0 : i32
    %c0_i32_0 = arith.constant 0 : i32
    %c0_i32_1 = arith.constant 0 : i32
    return %arg1, %c0_i32, %c0_i32_0 : i32, i32, i32
  }
  func.func @transform_12(%arg0: i32, %arg1: i32) -> (i32, i32, i32) {
    %c0_i32 = arith.constant 0 : i32
    %c0_i32_0 = arith.constant 0 : i32
    %c0_i32_1 = arith.constant 0 : i32
    return %arg1, %c0_i32, %c0_i32_0 : i32, i32, i32
  }
  func.func @transform_13(%arg0: i32, %arg1: i32) -> (i32, i32, i32) {
    %c0_i32 = arith.constant 0 : i32
    %c0_i32_0 = arith.constant 0 : i32
    %c0_i32_1 = arith.constant 0 : i32
    return %arg1, %c0_i32, %c0_i32_0 : i32, i32, i32
  }
  func.func @transform_14(%arg0: i32, %arg1: i32) -> (i32, i32, i32) {
    %c0_i32 = arith.constant 0 : i32
    %c0_i32_0 = arith.constant 0 : i32
    %c0_i32_1 = arith.constant 0 : i32
    return %arg1, %c0_i32, %c0_i32_0 : i32, i32, i32
  }
  func.func @transform_15(%arg0: i32, %arg1: i32) -> (i32, i32, i32) {
    %c0_i32 = arith.constant 0 : i32
    %c0_i32_0 = arith.constant 0 : i32
    %c0_i32_1 = arith.constant 0 : i32
    return %arg1, %c0_i32, %c0_i32_0 : i32, i32, i32
  }
  func.func @transform_16(%arg0: i32, %arg1: i32) -> (i32, i32) {
    %c0_i32 = arith.constant 0 : i32
    %c0_i32_0 = arith.constant 0 : i32
    %c0_i32_1 = arith.constant 0 : i32
    return %c0_i32, %c0_i32_0 : i32, i32
  }
  func.func @transform_17(%arg0: i32, %arg1: i32) -> (i32, i32) {
    %c0_i32 = arith.constant 0 : i32
    %c0_i32_0 = arith.constant 0 : i32
    %c0_i32_1 = arith.constant 0 : i32
    return %c0_i32, %c0_i32_0 : i32, i32
  }
  func.func @transform_18(%arg0: i32, %arg1: i32) -> (i32, i32) {
    %c0_i32 = arith.constant 0 : i32
    %c0_i32_0 = arith.constant 0 : i32
    %c0_i32_1 = arith.constant 0 : i32
    return %c0_i32, %c0_i32_0 : i32, i32
  }
  func.func @transform_19(%arg0: i32, %arg1: i32) -> (i32, i32) {
    %c0_i32 = arith.constant 0 : i32
    %c0_i32_0 = arith.constant 0 : i32
    %c0_i32_1 = arith.constant 0 : i32
    return %c0_i32, %c0_i32_0 : i32, i32
  }
  func.func @transform_20(%arg0: i32, %arg1: i32) -> (i32, i32, i32) {
    %c0_i32 = arith.constant 0 : i32
    %c0_i32_0 = arith.constant 0 : i32
    %c0_i32_1 = arith.constant 0 : i32
    return %arg0, %c0_i32, %c0_i32_0 : i32, i32, i32
  }
}

</mosaic_0001>

<bundles_post_ra>
// kernel: tpu_custom_call.1
= control target key start
LH: loop header
LB: loop body
LE: loop exit
PB: predicated region body
PF: predicated region fallthrough
CT: control target
= control target key end

     0   :  { %s3695_s0 = inlined_call_operand.vmem [shape: f32[2,24,48], index: 0, kind: input, shape index: {}]   ;;  %s3696_s1 = inlined_call_operand.vmem [shape: f32[48,32], index: 1, kind: input, shape index: {}]   ;;  %s3697_s2 = inlined_call_operand.vmem [shape: f32[1,32], index: 2, kind: input, shape index: {}]   ;;  %s3698_s3 = inlined_call_operand.vmem [shape: f32[1,1,32], index: 3, kind: input, shape index: {}]   ;;  %s3699_s4 = inlined_call_operand.vmem [shape: f32[1,24,32], index: 4, kind: input, shape index: {}]   ;;  %s3700_s5 = inlined_call_operand.vmem [shape: f32[2,1,32], index: 5, kind: input, shape index: {}]   ;;  %s3701_s6 = inlined_call_operand.vmem [shape: f32[2,1,32], index: 6, kind: input, shape index: {}]   ;;  %s3702_s7 = inlined_call_operand.vmem [shape: bf16[2,32,192], index: 7, kind: input, shape index: {}]   ;;  %s3703_s8 = inlined_call_operand.vmem [shape: bf16[2,64,32], index: 8, kind: input, shape index: {}]   ;;  %s3704_s9 = inlined_call_operand.vmem [shape: f32[2,1,32], index: 9, kind: input, shape index: {}]   ;;  %s3705_s10 = inlined_call_operand.vmem [shape: f32[2,1,32], index: 10, kind: input, shape index: {}]   ;;  %s3706_s11 = inlined_call_operand.vmem [shape: f32[2,1,32], index: 11, kind: input, shape index: {}]   ;;  %s3707_s12 = inlined_call_operand.vmem [shape: bf16[2,32,64], index: 12, kind: input, shape index: {}]   ;;  %s3708_s13 = inlined_call_operand.vmem [shape: f32[2,1,64], index: 13, kind: input, shape index: {}]   ;;  %s3709_s14 = inlined_call_operand.vmem [shape: bf16[2,64,32], index: 14, kind: input, shape index: {}]   ;;  %s3710_s15 = inlined_call_operand.vmem [shape: f32[2,1,32], index: 15, kind: input, shape index: {}]   ;;  %s3711_s16 = inlined_call_operand.vmem [shape: f32[1,32], index: 16, kind: input, shape index: {}]   ;;  %s3712_s17 = inlined_call_operand.vmem [shape: f32[1,32], index: 17, kind: input, shape index: {}]   ;;  %s3713_s18 = inlined_call_operand.vmem [shape: f32[32,128], index: 18, kind: input, shape index: {}]   ;;  %s3714_s19 = inlined_call_operand.vmem [shape: f32[1,128], index: 19, kind: input, shape index: {}]   ;;  %s3715_s20 = inlined_call_operand.hbm [shape: f32[2,1,128], index: 20, kind: output, shape index: {}]  }
   0x1   :  { %3731 = sst [smem:[#allocation18_spill]] %s3695_s0 }
   0x2   :  { %3732 = sst [smem:[#allocation19_spill]] %s3696_s1 }
   0x3   :  { %3733 = sst [smem:[#allocation20_spill]] %s3697_s2 }
   0x4   :  { %3734 = sst [smem:[#allocation21_spill]] %s3698_s3 }
   0x5   :  { %3735 = sst [smem:[#allocation22_spill]] %s3699_s4 }
   0x6   :  { %3736 = sst [smem:[#allocation23_spill]] %s3701_s6 }
   0x7   :  { %3737 = sst [smem:[#allocation24_spill]] %s3702_s7 }
   0x8   :  { %3738 = sst [smem:[#allocation25_spill]] %s3703_s8 }
   0x9   :  { %3739 = sst [smem:[#allocation26_spill]] %s3711_s16 }
   0xa   :  { %3740 = sst [smem:[#allocation27_spill]] %s3712_s17 }
   0xb   :  { %3741 = sst [smem:[#allocation28_spill]] %s3713_s18 }
   0xc   :  { %3742 = sst [smem:[#allocation29_spill]] %s3714_s19 }
   0xd   :  { %3743 = sst [smem:[#allocation30_spill]] %s3715_s20 }
   0xe   :  { %25 = vsyncpa [#allocation5], 0 }
   0xf   :  { %27 = vsyncpa [#allocation5 + $0x1], 0  ;;  %s3182_s1 = smov 0   ;;  %s3184_s22 = smov 0  }
  0x10   :  { %s3186_s23 = smov 0   ;;  %s3188_s24 = smov 0  }
  0x11   :  { %s3190_s2 = smov 0   ;;  %s3192_s25 = smov 0  }
  0x12   :  { %s3194_s3 = smov 0   ;;  %s3196_s26 = smov 0  }
  0x13 LB: > { %3744 = sst [smem:[#allocation7_spill]] %s3031_s1  ;;  %s2497_s27 = sadd.s32 4294967295, %s3059_s26   ;;  %s3059_s26 = sphi %s3196_s26, %s33_s26   ;;  %s3055_s3 = sphi %s3194_s3, %s3791_s3   ;;  %s3051_s25 = sphi %s3192_s25, %s3790_s25   ;;  %s3047_s2 = sphi %s3190_s2, %s3789_s2   ;;  %s3043_s24 = sphi %s3188_s24, %s3788_s24   ;;  %s3039_s23 = sphi %s3186_s23, %s3787_s23   ;;  %s3035_s22 = sphi %s3184_s22, %s3793_s22   ;;  %s3031_s1 = sphi %s3182_s1, %s3792_s1  }
  0x14   : > { %3745 = sst [smem:[#allocation8_spill]] %s3039_s23  ;;  %s2498_s28 = sadd.s32 4294967294, %s3059_s26  }
  0x15   : > { %3746 = sst [smem:[#allocation9_spill]] %s3047_s2  ;;  %s42_s4 = sadd.s32 1, %s3051_s25 }
  0x16   : > { %3747 = sst [smem:[#allocation10_spill]] %s3051_s25  ;;  %p43_p0 = scmp.ge.s32.totalorder %s42_s4, 2 }
  0x17   : > { %3748 = sst [smem:[#allocation11_spill]] %s3055_s3  ;;  %s45_s29 = sadd.s32 1, %s3055_s3 }
  0x18   : > { %3749 = sst [smem:[#allocation12_spill]] %s3059_s26  ;;  %p542_p1 = scmp.ne.s32.totalorder %s3039_s23, %s3035_s22 }
  0x19   : > { %p543_p2 = scmp.eq.s32.totalorder %s2497_s27, 3  ;;  %s3795_s4 = smov (%p43_p0, %s42_s4), 0 }
  0x1a   : > { %3750 = sst [smem:[#allocation13_spill]] %s3795_s4  ;;  %s3797_s29 = smov (!%p43_p0, %s45_s29), %s3055_s3 }
  0x1b   : > { %p3231_p3 = por %p543_p2, %p542_p1  ;;  %p548_p4 = scmp.ne.s32.totalorder %s3035_s22, %s3031_s1 }
  0x1c   : > { %p47_p5 = scmp.ge.s32.totalorder %s3797_s29, 2  ;;  %p549_p6 = scmp.eq.s32.totalorder %s2498_s28, 3 }
  0x1d   : > { %s3751_s30 = scalar_select %p3231_p3, 1, 0 }
  0x1e   : > { %p2501_p7 = scmp.ge.s32.totalorder %s3059_s26, 1  ;;  %p673_p8 = scmp.lt.s32.totalorder %s3059_s26, 5 }
  0x1f   : > { %3752 = sst [smem:[#allocation14_spill]] %s3751_s30  ;;  %s3799_s29 = smov (%p47_p5, %s3797_s29), 0 }
  0x20   : > { %3753 = sst [smem:[#allocation15_spill]] %s3799_s29  ;;  %p3241_p9 = por %p549_p6, %p548_p4 }
  0x21   : > { %p674_p10 = pnand %p2501_p7, %p673_p8  ;;  %s529_s21 = ssub.s32 %s3055_s3, %s3799_s29 }
  0x22   : > { %s3754_s0 = scalar_select %p3241_p9, 1, 0 }
  0x23   : > { %s532_s27 = sadd.s32 1, %s3039_s23  ;;  %p530_p11 = scmp.eq.s32.totalorder %s529_s21, 0 }
  0x24   : > { %3755 = sst [smem:[#allocation16_spill]] %s3754_s0  ;;  %677 = sbr.rel (%p674_p10) target bundleno = 4515 (0x11a3), region = 100 }
  0x25   : > { %s3249_s4 = scalar_select %p530_p11, %s3039_s23, %s532_s27  }
  0x26   : > { %p771_p12 = scmp.lt.s32.totalorder (!%p674_p10), %s3047_s2, 1  ;;  %p776_p13 = scmp.lt.s32.totalorder (!%p674_p10), %s3043_s24, 1 }
  0x27   : > { %3756 = sst [smem:[#allocation17_spill]] %s3249_s4  ;;  %s3758_s20 = sld [smem:[#allocation18_spill]] (!%p674_p10) }
  0x28   : > { %s3759_s7 = sld [smem:[#allocation24_spill]] (!%p674_p10)  ;;  %s3760_s8 = sld [smem:[#allocation25_spill]] (!%p674_p10) }
  0x29   : > { %s3761_s0 = sand.u32 (!%p674_p10), 1, %s3035_s22   ;;  %p2511_p0 = scmp.ne.s32.totalorder (!%p674_p10), %s3043_s24, 0 }
  0x2b   : > { %s772_s25 = scalar_select %p771_p12, %s3047_s2, 1 }
  0x2c   : > { %s3256_s1 = scalar_select %p776_p13, %s3043_s24, 1 }
  0x2d   : > { %s2794_s21 = smul.u32 24, %s772_s25  ;;  %s3762_s19 = sld [smem:[#allocation19_spill]] (!%p2511_p0)  ;;  %v3061_v3 = vmov (!%p2511_p0), 0.0|0.0   ;;  %vm3062_vm0 = vmmov (!%p2511_p0), 0   ;;  %v3063_v6 = vmov (!%p2511_p0), 0.0   ;;  %vm838_vm1 = vcmask (!%p2511_p0), 392192  }
  0x2e   : > { %s2567_s2 = sshll.u32 %s3256_s1, 5  ;;  %s2569_s17 = sshll.u32 %s3256_s1, 4  ;;  %2776 = vmatprep.subr.bf16.mxu1 (!%p2511_p0), %v3061_v3  ;;  %2761 = vmatprep.subr.bf16.mxu0 (!%p2511_p0), %v3061_v3  ;;  %v928_v14 = vlaneseq (!%p2511_p0)  ;;  %vm957_vm3 = vcmask (!%p2511_p0), 261120  }
  0x2f   : > { %s3269_s30 = scalar_lea.vmem %s3758_s20, %s2794_s21  ;;  %s3275_s16 = scalar_lea.vmem %s3759_s7, %s2567_s2  ;;  %2648 = vmatprep.mubr.msk.f32.mxu1 (!%p2511_p0), %vm3062_vm0, %v3063_v6  ;;  %2645 = vmatprep.mubr.msk.f32.mxu0 (!%p2511_p0), %vm3062_vm0, %v3063_v6 }
  0x30   : > { %s3280_s29 = scalar_lea.vmem %s3760_s8, %s2567_s2  ;;  %s797_s20 = scalar_lea.vmem %s3705_s10, %s3256_s1  ;;  %v823_v11 = vld [vmem:[%s3269_s30 + $0x8] sm:$0xff] (!%p2511_p0)  ;;  %v822_v12 = vld [vmem:[%s3269_s30] sm:$0xff] (!%p2511_p0)  ;;  %v824_v13 = vld [vmem:[%s3269_s30 + $0x10] sm:$0xff] (!%p2511_p0)  ;;  %v929_v15 = vshrl.u32 (!%p2511_p0), %v928_v14, 7 }
  0x31   : > { %s3298_s6 = scalar_lea.vmem %s3707_s12, %s2569_s17  ;;  %s808_s8 = scalar_lea.vmem %s3708_s13, %s3256_s1 }
  0x32   : > { %s3307_s3 = scalar_lea.vmem %s3709_s14, %s2567_s2  ;;  %s3315_s21 = scalar_lea.vmem [#allocation4], %s3761_s0  ;;  %vm939_vm2 = vcmp.eq.s32.totalorder (!%p2511_p0), %v929_v15, 0  ;;  %v931_v21 = vadd.s32 (!%p2511_p0), 16, %v929_v15 }
  0x33   : > { %821 = sbr.rel (%p2511_p0) target bundleno = 287 (0x11f), region = 104  ;;  %v825_v0 = vld [vmem:[%s3762_s19] sm:$0xff] (!%p2511_p0)  ;;  %v826_v1 = vld [vmem:[%s3762_s19 + $0x8] sm:$0xff] (!%p2511_p0)  ;;  %v827_v2 = vld [vmem:[%s3762_s19 + $0x10] sm:$0xff] (!%p2511_p0)  ;;  %s3763_s2 = sld [smem:[#allocation20_spill]] (!%p2511_p0) }
  0x34   : > { %v2762_v4 = vpack.c.bf16 (!%p2511_p0), %v826_v1, %v825_v0  ;;  %v828_v5 = vld [vmem:[%s3762_s19 + $0x18] sm:$0xff] (!%p2511_p0)  ;;  %v829_v8 = vld [vmem:[%s3762_s19 + $0x20] sm:$0xff] (!%p2511_p0)  ;;  %v830_v9 = vld [vmem:[%s3762_s19 + $0x28] sm:$0xff] (!%p2511_p0)  ;;  %s3764_s23 = sld [smem:[#allocation22_spill]] (!%p2511_p0)  ;;  %s3766_s17 = sld [smem:[#allocation21_spill]] (!%p2511_p0)  ;;  %vm944_vm4 = vcmp.lt.s32.totalorder (!%p2511_p0), %v931_v21, 17 }
  0x35   : > { %v2765_v7 = vpack.c.bf16 (!%p2511_p0), %v828_v5, %v827_v2  ;;  %v2768_v10 = vpack.c.bf16 (!%p2511_p0), %v830_v9, %v829_v8 }
  0x36   : > { %2779 = vmatpush3.bf16.msra.mxu1 (!%p2511_p0), %v2762_v4  ;;  %2763 = vmatpush3.bf16.msra.mxu0 (!%p2511_p0), %v2762_v4 }
  0x37   : > { %2777 = vmatprep.subr.bf16.mxu1 (!%p2511_p0), %v3061_v3  ;;  %2764 = vmatprep.subr.bf16.mxu0 (!%p2511_p0), %v3061_v3 }
  0x39   : > { %v2512_v16 = vld [vmem:[%s3763_s2] ss:$0 sm:$0xff] (!%p2511_p0) }
  0x3a   : > { %2780 = vmatpush3.bf16.msra.mxu1 %v2765_v7  ;;  %2766 = vmatpush3.bf16.msra.mxu0 %v2765_v7  ;;  %s3765_s4 = smov %s3764_s23  ;;  %v952_v17 = vld [vmem:[%s3764_s23 + $0x8] sm:$0xff]  ;;  %v2516_v20 = vld [vmem:[%s3766_s17] ss:$0 sm:$0xff] }
  0x3b   : > { %2778 = vmatprep.subr.bf16.mxu1 %v3061_v3  ;;  %2767 = vmatprep.subr.bf16.mxu0 %v3061_v3  ;;  %v951_v25 = vld [vmem:[%s3765_s4] sm:$0xff]  ;;  %v953_v32 = vld [vmem:[%s3765_s4 + $0x10] sm:$0xff] }
  0x3e   : > { %2781 = vmatpush3.bf16.msra.mxu1 %v2768_v10  ;;  %2769 = vmatpush3.bf16.msra.mxu0 %v2768_v10 }
  0x41   : > { %2649 = vmatmul.mubr.msk.f32.vlgmr.msra.gmra.mrb[0].mxu1 %vm838_vm1, %v823_v11  ;;  %2646 = vmatmul.mubr.msk.f32.vlgmr.msra.gmra.mrb[0].mxu0 %vm838_vm1, %v822_v12 }
  0x42   : > { %2651 = vmatprep.mubr.msk.f32.mxu1 %vm3062_vm0, %v3063_v6 }
  0x45   : > { %2652 = vmatmul.mubr.msk.f32.gmra.mrb[2].mxu1 %vm838_vm1, %v824_v13 }
 0x114   : > { %v919_v18 = vpop.f32.mrb[0].mxu1  ;;  %v914_v19 = vpop.f32.mrb[0].mxu0 }
 0x115   : > { %v920_v22 = vadd.f32 %v2512_v16, %v919_v18  ;;  %v2650_v23 = vpop.f32.mrb[1].mxu1  ;;  %v915_v24 = vadd.f32 %v2512_v16, %v914_v19  ;;  %v2647_v26 = vpop.f32.mrb[1].mxu0 }
 0x117   : > { %v955_v27 = vadd.f32 %v952_v17, %v920_v22  ;;  %v948_v28 = vsel %vm939_vm2, %v2516_v20, %v915_v24 }
 0x118   : > { %v954_v29 = vadd.f32 %v951_v25, %v948_v28  ;;  %v924_v30 = vpop.f32.mrb[2].mxu1 }
 0x119   : > { %959 = vst.msk [vmem:[#allocation2 + $0x8] sm:$0xff] %vm957_vm3, %v955_v27  ;;  %v925_v31 = vadd.f32 %v2512_v16, %v924_v30  ;;  %v2653_v33 = vpop.f32.mrb[3].mxu1 }
 0x11a   : > { %958 = vst.msk [vmem:[#allocation2] sm:$0xff] %vm957_vm3, %v954_v29 }
 0x11b   : > { %v947_v34 = vsel %vm944_vm4, %v925_v31, 0.0 }
 0x11c   : > { %v956_v35 = vadd.f32 %v953_v32, %v947_v34 }
 0x11e   : > { %960 = vst.msk [vmem:[#allocation2 + $0x10] sm:$0xff] %vm957_vm3, %v956_v35 }
 0x11f PF: > { %vm966_vm5 = vcmask 261120   ;;  %v2881_v57 = vld [vmem:[%s3275_s16 + $0x4] ss:$8 sps:$4 sm:$0xff]   ;;  %v2883_v58 = vld [vmem:[%s3275_s16] ss:$8 sps:$4 sm:$0xff]   ;;  %v3064_v61 = vmov 0   ;;  %s3767_s2 = scalar_lea.vmem %s3700_s5, %s3256_s1  ;;  %s3770_s28 = scalar_lea.vmem %s3704_s9, %s3256_s1 }
 0x120   : > { %v3361_v38 = vld [vmem:[#allocation2 + $0x8] sm:$0xff]  ;;  %1057 = vmatprep.subr.bf16.mxu0 %v2881_v57  ;;  %v2884_v59 = vld [vmem:[%s3275_s16 + $0x14] ss:$8 sps:$4 sm:$0xff]   ;;  %v2886_v60 = vld [vmem:[%s3275_s16 + $0x10] ss:$8 sps:$4 sm:$0xff]   ;;  %1089 = vmatprep.mubr.bf16.mxu0 %v3064_v61  ;;  %s3768_s23 = sld [smem:[#allocation23_spill]] }
 0x121   : > { %v3357_v36 = vld [vmem:[#allocation2] sm:$0xff]  ;;  %v970_v41 = vsel %vm966_vm5, %v3361_v38, 0.0  ;;  %1058 = vmatpush1.bf16.msra.mxu0 %v2883_v58  ;;  %vm1127_vm6 = vcmask 130048   ;;  %s3065_s7 = smov 64   ;;  %s3066_s17 = smov 112   ;;  %vm1230_vm7 = vcmask 1043456  }
 0x122   : > { %v967_v39 = vsel %vm966_vm5, %v3357_v36, 0.0  ;;  %1059 = vmatprep.subr.bf16.mxu0 %v2884_v59  ;;  %v2517_v9 = vld [vmem:[%s3767_s2] ss:$0 sm:$0xff]  ;;  %s3067_s30 = smov 48   ;;  %vm1188_vm9 = vcmask 195584   ;;  %s3069_s18 = smov 32  }
 0x123   : > { %968 = vadd.xlane.f32.xlu0 %v967_v39  ;;  %s3070_s25 = smov 96   ;;  %s3071_s16 = smov 16   ;;  %vm1466_vm10 = vcmask 261248   ;;  %vm1647_vm11 = vcmask 392448   ;;  %vm1828_vm12 = vcmask 523648   ;;  %vm1869_vm13 = vcmask 523264  }
 0x124   : > { %s3072_s26 = smov 80   ;;  %p2562_p1 = scmp.ne.s32.totalorder %s3043_s24, 1 }
 0x125   : > { %v3359_v37 = vld [vmem:[#allocation2 + $0x10] sm:$0xff]  ;;  %1060 = vmatpush1.bf16.msra.mxu0 %v2886_v60  ;;  %vm2212_vm14 = vcmask (!%p2562_p1), 253952   ;;  %vm3074_vm15 = vmmov (!%p2562_p1), 0  }
 0x126   : > { %v973_v40 = vsel %vm966_vm5, %v3359_v37, 0.0  ;;  %s3769_s0 = scalar_lea.vmem %s3768_s23, %s3256_s1 }
 0x127   : > { %974 = vadd.xlane.f32.xlu1 %v973_v40  ;;  %971 = vadd.xlane.f32.xlu0 %v970_v41  ;;  %v2518_v14 = vld [vmem:[%s3769_s0] ss:$0 sm:$0xff]  ;;  %s3775_s0 = sld [smem:[#allocation26_spill]] (!%p2562_p1) }
 0x1b0   : > { %v969_v42 = vpop.xlane.xlu0 %968 }
 0x1b1   : > { %v977_v44 = vmul.f32 0.03125, %v969_v42 }
 0x1b3   : > { %v980_v46 = vsub.f32 %v3357_v36, %v977_v44 }
 0x1b4   : > { %v975_v43 = vpop.xlane.xlu1 %974  ;;  %v972_v48 = vpop.xlane.xlu0 %971 }
 0x1b5   : > { %v979_v45 = vmul.f32 0.03125, %v975_v43  ;;  %v978_v49 = vmul.f32 0.03125, %v972_v48  ;;  %v983_v50 = vmul.f32 %v980_v46, %v980_v46 }
 0x1b7   : > { %v982_v47 = vsub.f32 %v3359_v37, %v979_v45  ;;  %v981_v52 = vsub.f32 %v3361_v38, %v978_v49  ;;  %v986_v53 = vsel %vm966_vm5, %v983_v50, 0.0 }
 0x1b8   : > { %987 = vadd.xlane.f32.xlu1 %v986_v53 }
 0x1b9   : > { %v985_v51 = vmul.f32 %v982_v47, %v982_v47  ;;  %v984_v55 = vmul.f32 %v981_v52, %v981_v52 }
 0x1bb   : > { %v992_v54 = vsel %vm966_vm5, %v985_v51, 0.0  ;;  %v989_v56 = vsel %vm966_vm5, %v984_v55, 0.0 }
 0x1bc   : > { %993 = vadd.xlane.f32.xlu1 %v992_v54  ;;  %990 = vadd.xlane.f32.xlu0 %v989_v56  ;;  %v1111_v54 = vlaneseq  ;;  %v3068_v56 = vmov -1e+30  }
 0x1be   : > { %v1112_v55 = vand.u32 127, %v1111_v54 }
 0x1c0   : > { %vm1113_vm8 = vcmp.lt.s32.totalorder %v1112_v55, 17 }
 0x1c1   : > { %v3433_v57 = vsel %vm1113_vm8, 0.0, %v3068_v56 }
 0x245   : > { %v988_v62 = vpop.xlane.xlu1 %987 }
 0x246   : > { %v995_v63 = vmul.f32 0.03125, %v988_v62 }
 0x248   : > { %v998_v0 = vadd.f32 1e-05, %v995_v63 }
 0x249   : > { %v994_v1 = vpop.xlane.xlu1 %993  ;;  %v991_v2 = vpop.xlane.xlu0 %990 }
 0x24a   : > { %2897 = vrsqrt.f32 %v998_v0  ;;  %v997_v3 = vmul.f32 0.03125, %v994_v1  ;;  %v996_v4 = vmul.f32 0.03125, %v991_v2 }
 0x24c   : > { %v1000_v5 = vadd.f32 1e-05, %v997_v3  ;;  %v999_v6 = vadd.f32 1e-05, %v996_v4 }
 0x24e   : > { %2899 = vrsqrt.f32 %v1000_v5 }
 0x24f   : > { %2901 = vrsqrt.f32 %v999_v6 }
 0x254   : > { %v2898_v7 = vpop.eup %2897 }
 0x255   : > { %v1004_v8 = vmul.f32 %v2898_v7, %v980_v46 }
 0x257   : > { %v1013_v13 = vmul.f32 %v2517_v9, %v1004_v8 }
 0x258   : > { %v2900_v10 = vpop.eup %2899 }
 0x259   : > { %v2902_v11 = vpop.eup %2901  ;;  %v1006_v16 = vmul.f32 %v2900_v10, %v982_v47  ;;  %v1022_v17 = vadd.f32 %v2518_v14, %v1013_v13 }
 0x25a   : > { %v1005_v12 = vmul.f32 %v2902_v11, %v981_v52 }
 0x25b   : > { %v1015_v20 = vmul.f32 %v2517_v9, %v1006_v16 }
 0x25c   : > { %v1014_v15 = vmul.f32 %v2517_v9, %v1005_v12 }
 0x25d   : > { %v1024_v21 = vadd.f32 %v2518_v14, %v1015_v20 }
 0x25e   : > { %v1023_v18 = vadd.f32 %v2518_v14, %v1014_v15 }
 0x25f   : > { %v1026_v22 = vpack.c.bf16 %v1024_v21, %v1024_v21 }
 0x260   : > { %v1025_v19 = vpack.c.bf16 %v1023_v18, %v1022_v17 }
 0x262   : > { %2523 = vmatmul.mubr.msk.bf16.vlgmr.msra.gmra.mrb[0].mxu0 %vm966_vm5, %v1025_v19 }
 0x263   : > { %1099 = vmatprep.mubr.bf16.mxu0 %v3064_v61 }
 0x26a   : > { %2524 = vmatmul.mubr.msk.bf16.gmra.mrb[4].mxu0 %vm966_vm5, %v1026_v22 }
 0x335   : > { %v1091_v23 = vpop.f32.mrb[0].mxu0 }
 0x336   : > { %v1093_v24 = vpop.f32.mrb[1].mxu0  ;;  %v1108_v26 = vmul.f32 0.25, %v1091_v23 }
 0x337   : > { %v1095_v25 = vpop.f32.mrb[2].mxu0 }
 0x338   : > { %v1109_v27 = vmul.f32 0.25, %v1095_v25  ;;  %v3391_v28 = vpack.c.bf16 %v1095_v25, %v1091_v23  ;;  %v1097_v29 = vpop.f32.mrb[3].mxu0 }
 0x339   : > { %v3393_v30 = vpack.c.bf16 %v1097_v29, %v1093_v24 }
 0x33a   : > { %v3395_v31 = vpack.c.bf16 %v1109_v27, %v1108_v26  ;;  %1123 = vrot.lane.b32.xlu0 %v3391_v28, %s3065_s7 }
 0x33b   : > { %2662 = vmatprep.subr.bf16.mxu0 %v3393_v30 }
 0x33c   : > { %2658 = vmatprep.mubr.msk.bf16.mxu1 %vm1127_vm6, %v3395_v31  ;;  %2663 = vmatpush3.bf16.msra.mxu0 %v3393_v30 }
 0x33d   : > { %v1101_v32 = vpop.f32.mrb[4].mxu0 }
 0x33e   : > { %v3402_v33 = vpack.c.bf16 %v1101_v32, %v1101_v32  ;;  %1287 = vrot.lane.b32.xlu0 %v3395_v31, %s3066_s17  ;;  %v1103_v34 = vpop.f32.mrb[5].mxu0  ;;  %v1110_v42 = vmul.f32 0.25, %v1101_v32 }
 0x33f   : > { %v3406_v35 = vpack.c.bf16 %v1103_v34, %v1103_v34  ;;  %v1105_v39 = vpop.f32.mrb[6].mxu0 }
 0x340   : > { %1125 = vrot.lane.b32.xlu1 %v3402_v33, %s3065_s7  ;;  %v1106_v40 = vpop.f32.mrb[7].mxu0  ;;  %v3417_v43 = vpack.c.bf16 %v1110_v42, %v1110_v42  ;;  %s3771_s7 = scalar_lea.vmem %s3706_s11, %s3256_s1 }
 0x341   : > { %2784 = vmatprep.subr.msk.bf16.mxu0 %vm1230_vm7, %v3406_v35  ;;  %v1232_v41 = vsel %vm1230_vm7, %v3406_v35, 0 }
 0x342   : > { %2665 = vmatpush3.bf16.msra.mxu0 %v1232_v41 }
 0x344   : > { %1291 = vrot.lane.b32.xlu1 %v3391_v28, %s3067_s30 }
 0x348   : > { %1293 = vrot.lane.b32.xlu1 %v3402_v33, %s3067_s30 }
 0x34c   : > { %1289 = vrot.lane.b32.xlu1 %v3417_v43, %s3066_s17 }
 0x3ac   : > { %v1124_v44 = vpop.permute.xlu0 %1123 }
 0x3ad   : > { %2782 = vmatprep.subr.msk.bf16.mxu1 %vm1127_vm6, %v1124_v44  ;;  %v1135_v45 = vsel %vm1127_vm6, %v1124_v44, 0 }
 0x3ae   : > { %2655 = vmatpush3.bf16.xpose.msra.mxu1 %v1135_v45 }
 0x3b0   : > { %v1288_v49 = vpop.permute.xlu0 %1287 }
 0x3b2   : > { %v1126_v46 = vpop.permute.xlu1 %1125 }
 0x3b3   : > { %2783 = vmatprep.subr.msk.bf16.mxu1 %vm1127_vm6, %v1126_v46  ;;  %v1138_v47 = vsel %vm1127_vm6, %v1126_v46, 0 }
 0x3b6   : > { %2657 = vmatpush3.bf16.xpose.msra.mxu1 %v1138_v47  ;;  %v1292_v48 = vpop.permute.xlu1 %1291 }
 0x3b7   : > { %2785 = vmatprep.subr.msk.bf16.mxu1 %vm1127_vm6, %v1292_v48  ;;  %v1302_v50 = vsel %vm1127_vm6, %v1292_v48, 0 }
 0x3ba   : > { %v1294_v51 = vpop.permute.xlu1 %1293 }
 0x3bb   : > { %v1305_v52 = vsel %vm1127_vm6, %v1294_v51, 0 }
 0x3bd   : > { %2659 = vmatmul.mubr.msk.bf16.vlgmr.msra.gmra.mrb[0].mxu1 %vm1127_vm6, %v3417_v43 }
 0x3be   : > { %2671 = vmatpush3.bf16.xpose.msra.mxu1 %v1302_v50  ;;  %2674 = vmatprep.mubr.msk.bf16.mxu1 %vm1127_vm6, %v1288_v49  ;;  %v1290_v53 = vpop.permute.xlu1 %1289 }
 0x3bf   : > { %2786 = vmatprep.subr.msk.bf16.mxu1 %vm1127_vm6, %v1294_v51 }
 0x3c6   : > { %2673 = vmatpush3.bf16.xpose.msra.mxu1 %v1305_v52 }
 0x3cd   : > { %2675 = vmatmul.mubr.msk.bf16.vlgmr.msra.gmra.mrb[4].mxu1 %vm1127_vm6, %v1290_v53 }
 0x490   : > { %v2660_v58 = vpop.f32.mrb[0].mxu1 }
 0x491   : > { %v1174_v59 = vpop.f32.mrb[1].mxu1  ;;  %v1183_v63 = vadd.f32 %v2660_v58, %v3433_v57 }
 0x492   : > { %v1175_v60 = vadd.f32 %v1174_v59, %v3433_v57  ;;  %v2661_v61 = vpop.f32.mrb[2].mxu1 }
 0x493   : > { %v1177_v62 = vpop.f32.mrb[3].mxu1  ;;  %v1195_v3 = vsel %vm1188_vm9, %v1183_v63, -inf }
 0x494   : > { %v1178_v0 = vadd.f32 %v1177_v62, %v3433_v57  ;;  %v1189_v1 = vsel %vm1188_vm9, %v1175_v60, -inf }
 0x495   : > { %1190 = vmax.xlane.f32.xlu0 %v1189_v1 }
 0x496   : > { %v1192_v2 = vsel %vm1188_vm9, %v1178_v0, -inf }
 0x497   : > { %1193 = vmax.xlane.f32.xlu1 %v1192_v2 }
 0x499   : > { %1196 = vmax.xlane.f32.xlu0 %v1195_v3 }
 0x4a0   : > { %v2676_v4 = vpop.f32.mrb[4].mxu1 }
 0x4a1   : > { %v1350_v5 = vadd.f32 %v2676_v4, %v3433_v57  ;;  %v1341_v6 = vpop.f32.mrb[5].mxu1 }
 0x4a2   : > { %v1342_v7 = vadd.f32 %v1341_v6, %v3433_v57  ;;  %v2677_v8 = vpop.f32.mrb[6].mxu1 }
 0x4a3   : > { %v1344_v9 = vpop.f32.mrb[7].mxu1  ;;  %v1361_v10 = vsel %vm1188_vm9, %v1350_v5, -inf }
 0x4a4   : > { %v1345_v11 = vadd.f32 %v1344_v9, %v3433_v57  ;;  %1362 = vmax.xlane.f32.xlu1 %v1361_v10  ;;  %v1355_v12 = vsel %vm1188_vm9, %v1342_v7, -inf }
 0x4a5   : > { %1356 = vmax.xlane.f32.xlu0 %v1355_v12 }
 0x4a6   : > { %v1358_v13 = vsel %vm1188_vm9, %v1345_v11, -inf }
 0x4a9   : > { %1359 = vmax.xlane.f32.xlu0 %v1358_v13 }
 0x522   : > { %v1191_v14 = vpop.xlane.xlu0 %1190 }
 0x523   : > { %v1198_v16 = vsub.f32 %v1175_v60, %v1191_v14 }
 0x524   : > { %v1194_v15 = vpop.xlane.xlu1 %1193 }
 0x525   : > { %v1199_v17 = vsub.f32 %v1178_v0, %v1194_v15  ;;  %v1201_v21 = vmul.f32 1.442695, %v1198_v16 }
 0x526   : > { %v1197_v18 = vpop.xlane.xlu0 %1196 }
 0x527   : > { %v1203_v19 = vmul.f32 1.442695, %v1199_v17  ;;  %v1200_v20 = vsub.f32 %v1183_v63, %v1197_v18 }
 0x529   : > { %2903 = vpow2.f32 %v1203_v19  ;;  %v1205_v22 = vmul.f32 1.442695, %v1200_v20 }
 0x52b   : > { %2905 = vpow2.f32 %v1205_v22 }
 0x52c   : > { %2907 = vpow2.f32 %v1201_v21 }
 0x531   : > { %v1363_v23 = vpop.xlane.xlu1 %1362 }
 0x532   : > { %v1366_v24 = vsub.f32 %v1350_v5, %v1363_v23  ;;  %v1357_v25 = vpop.xlane.xlu0 %1356 }
 0x533   : > { %v2904_v26 = vpop.eup %2903  ;;  %v1364_v27 = vsub.f32 %v1342_v7, %v1357_v25 }
 0x534   : > { %v1371_v29 = vmul.f32 1.442695, %v1366_v24  ;;  %v1210_v32 = vsel %vm1188_vm9, %v2904_v26, 0.0 }
 0x535   : > { %v2906_v34 = vpop.eup %2905  ;;  %v1367_v39 = vmul.f32 1.442695, %v1364_v27  ;;  %1211 = vadd.xlane.f32.xlu1 %v1210_v32 }
 0x536   : > { %2909 = vpow2.f32 %v1371_v29  ;;  %v1360_v40 = vpop.xlane.xlu0 %1359  ;;  %v1213_v41 = vsel %vm1188_vm9, %v2906_v34, 0.0  ;;  %v2908_v42 = vpop.eup %2907 }
 0x537   : > { %v1365_v44 = vsub.f32 %v1345_v11, %v1360_v40  ;;  %1214 = vadd.xlane.f32.xlu0 %v1213_v41  ;;  %2911 = vpow2.f32 %v1367_v39  ;;  %v1207_v46 = vsel %vm1188_vm9, %v2908_v42, 0.0 }
 0x539   : > { %v1369_v45 = vmul.f32 1.442695, %v1365_v44 }
 0x53b   : > { %2913 = vpow2.f32 %v1369_v45  ;;  %1208 = vadd.xlane.f32.xlu0 %v1207_v46 }
 0x540   : > { %v2910_v47 = vpop.eup %2909 }
 0x541   : > { %v1379_v48 = vsel %vm1188_vm9, %v2910_v47, 0.0  ;;  %v2912_v49 = vpop.eup %2911 }
 0x542   : > { %1380 = vadd.xlane.f32.xlu1 %v1379_v48  ;;  %v1373_v51 = vsel %vm1188_vm9, %v2912_v49, 0.0 }
 0x545   : > { %v2914_v50 = vpop.eup %2913 }
 0x546   : > { %1374 = vadd.xlane.f32.xlu1 %v1373_v51  ;;  %v1376_v52 = vsel %vm1188_vm9, %v2914_v50, 0.0 }
 0x547   : > { %1377 = vadd.xlane.f32.xlu0 %v1376_v52 }
 0x557   : > { %1394 = vrot.lane.b32.xlu1 %v3406_v35, %s3066_s17 }
 0x55b   : > { %1474 = vrot.lane.b32.xlu1 %v3391_v28, %s3069_s18 }
 0x55d   : > { %1392 = vrot.lane.b32.xlu0 %v3393_v30, %s3066_s17  ;;  %s3776_s17 = sld [smem:[#allocation27_spill]] (!%p2562_p1) }
 0x55f   : > { %1476 = vrot.lane.b32.xlu1 %v3402_v33, %s3069_s18 }
 0x561   : > { %1470 = vrot.lane.b32.xlu0 %v3395_v31, %s3070_s25 }
 0x563   : > { %1472 = vrot.lane.b32.xlu1 %v3417_v43, %s3070_s25 }
 0x5c2   : > { %v1212_v53 = vpop.xlane.xlu1 %1211 }
 0x5c4   : > { %v1215_v54 = vpop.xlane.xlu0 %1214 }
 0x5c5   : > { %2915 = vrcp.f32 %v1215_v54 }
 0x5c6   : > { %2917 = vrcp.f32 %v1212_v53 }
 0x5c8   : > { %v1209_v55 = vpop.xlane.xlu0 %1208 }
 0x5c9   : > { %2919 = vrcp.f32 %v1209_v55 }
 0x5cf   : > { %v1381_v56 = vpop.xlane.xlu1 %1380  ;;  %v2916_v58 = vpop.eup %2915 }
 0x5d0   : > { %v2918_v59 = vpop.eup %2917  ;;  %2921 = vrcp.f32 %v1381_v56  ;;  %v1221_v61 = vmul.f32 %v2916_v58, %v2906_v34 }
 0x5d1   : > { %v1220_v1 = vmul.f32 %v2918_v59, %v2904_v26 }
 0x5d2   : > { %v1223_v3 = vpack.c.bf16 %v1221_v61, %v1221_v61 }
 0x5d3   : > { %v2920_v60 = vpop.eup %2919  ;;  %v1375_v62 = vpop.xlane.xlu1 %1374 }
 0x5d4   : > { %2923 = vrcp.f32 %v1375_v62  ;;  %v1378_v63 = vpop.xlane.xlu0 %1377  ;;  %v1219_v0 = vmul.f32 %v2920_v60, %v2908_v42 }
 0x5d5   : > { %2925 = vrcp.f32 %v1378_v63 }
 0x5d6   : > { %v1222_v2 = vpack.c.bf16 %v1220_v1, %v1219_v0 }
 0x5d7   : > { %v1395_v4 = vpop.permute.xlu1 %1394 }
 0x5d8   : > { %2666 = vmatprep.mubr.msk.bf16.mxu0 %vm1188_vm9, %v1222_v2  ;;  %v1393_v5 = vpop.permute.xlu0 %1392  ;;  %v1404_v7 = vsel %vm1230_vm7, %v1395_v4, 0 }
 0x5d9   : > { %2667 = vmatmul.mubr.msk.bf16.vlgmr.msra.gmra.mrb[8].mxu0 %vm1188_vm9, %v1223_v3  ;;  %2678 = vmatprep.subr.bf16.mxu0 %v1393_v5 }
 0x5da   : > { %2679 = vmatpush3.bf16.msra.mxu0 %v1393_v5  ;;  %v2922_v6 = vpop.eup %2921 }
 0x5db   : > { %2787 = vmatprep.subr.msk.bf16.mxu0 %vm1230_vm7, %v1395_v4  ;;  %v1475_v9 = vpop.permute.xlu1 %1474  ;;  %v1387_v11 = vmul.f32 %v2922_v6, %v2910_v47 }
 0x5dc   : > { %v1471_v16 = vpop.permute.xlu0 %1470  ;;  %v1485_v17 = vsel %vm1127_vm6, %v1475_v9, 0 }
 0x5dd   : > { %v1389_v15 = vpack.c.bf16 %v1387_v11, %v1387_v11 }
 0x5de   : > { %v2924_v8 = vpop.eup %2923  ;;  %2681 = vmatpush3.bf16.msra.mxu0 %v1404_v7 }
 0x5df   : > { %v2926_v10 = vpop.eup %2925  ;;  %2788 = vmatprep.subr.msk.bf16.mxu0 %vm1127_vm6, %v1475_v9  ;;  %v1385_v12 = vmul.f32 %v2924_v8, %v2912_v49  ;;  %v1477_v18 = vpop.permute.xlu1 %1476 }
 0x5e0   : > { %v1386_v13 = vmul.f32 %v2926_v10, %v2914_v50  ;;  %v1488_v19 = vsel %vm1127_vm6, %v1477_v18, 0 }
 0x5e2   : > { %v1388_v14 = vpack.c.bf16 %v1386_v13, %v1385_v12 }
 0x5e3   : > { %v1473_v20 = vpop.permute.xlu1 %1472 }
 0x5e4   : > { %2682 = vmatprep.mubr.msk.bf16.mxu0 %vm1188_vm9, %v1388_v14 }
 0x5e5   : > { %2683 = vmatmul.mubr.msk.bf16.vlgmr.msra.gmra.mrb[12].mxu0 %vm1188_vm9, %v1389_v15 }
 0x5e6   : > { %2690 = vmatprep.mubr.msk.bf16.mxu0 %vm1127_vm6, %v1471_v16 }
 0x5e7   : > { %2687 = vmatpush3.bf16.xpose.msra.mxu0 %v1485_v17 }
 0x5e8   : > { %2789 = vmatprep.subr.msk.bf16.mxu0 %vm1127_vm6, %v1477_v18 }
 0x5ef   : > { %2689 = vmatpush3.bf16.xpose.msra.mxu0 %v1488_v19 }
 0x5f6   : > { %2691 = vmatmul.mubr.msk.bf16.vlgmr.msra.gmra.mrb[16].mxu0 %vm1127_vm6, %v1473_v20 }
 0x6ac   : > { %v2668_v21 = vpop.f32.mrb[8].mxu0 }
 0x6ad   : > { %1284 = vst.msk [vmem:[#allocation3 + $0x10] sm:$0xff] %vm1127_vm6, %v2668_v21  ;;  %v1268_v22 = vpop.f32.mrb[9].mxu0 }
 0x6ae   : > { %1282 = vst.msk [vmem:[#allocation3] sm:$0xff] %vm1127_vm6, %v1268_v22  ;;  %v2669_v23 = vpop.f32.mrb[10].mxu0 }
 0x6af   : > { %v1271_v24 = vpop.f32.mrb[11].mxu0 }
 0x6b0   : > { %1283 = vst.msk [vmem:[#allocation3 + $0x8] sm:$0xff] %vm1127_vm6, %v1271_v24 }
 0x6b8   : > { %v3480_v25 = vpop.f32.mrb[12].mxu0 }
 0x6b9   : > { %v3482_v26 = vpop.f32.mrb[13].mxu0 }
 0x6ba   : > { %v2685_v27 = vpop.f32.mrb[14].mxu0 }
 0x6bb   : > { %v3484_v29 = vpop.f32.mrb[15].mxu0 }
 0x6c9   : > { %v2692_v32 = vpop.f32.mrb[16].mxu0 }
 0x6ca   : > { %v1524_v34 = vpop.f32.mrb[17].mxu0  ;;  %v1533_v42 = vadd.f32 %v2692_v32, %v3433_v57 }
 0x6cb   : > { %v1525_v39 = vadd.f32 %v1524_v34, %v3433_v57  ;;  %v2693_v40 = vpop.f32.mrb[18].mxu0 }
 0x6cc   : > { %v1527_v41 = vpop.f32.mrb[19].mxu0  ;;  %v1544_v47 = vsel %vm1188_vm9, %v1533_v42, -inf }
 0x6cd   : > { %v1528_v44 = vadd.f32 %v1527_v41, %v3433_v57  ;;  %v1538_v45 = vsel %vm1188_vm9, %v1525_v39, -inf }
 0x6ce   : > { %1539 = vmax.xlane.f32.xlu0 %v1538_v45 }
 0x6cf   : > { %v1541_v46 = vsel %vm1188_vm9, %v1528_v44, -inf }
 0x6d0   : > { %1542 = vmax.xlane.f32.xlu1 %v1541_v46 }
 0x6d2   : > { %1545 = vmax.xlane.f32.xlu0 %v1544_v47 }
 0x75b   : > { %v1540_v48 = vpop.xlane.xlu0 %1539 }
 0x75c   : > { %v1547_v49 = vsub.f32 %v1525_v39, %v1540_v48 }
 0x75d   : > { %v1543_v50 = vpop.xlane.xlu1 %1542 }
 0x75e   : > { %v1550_v51 = vmul.f32 1.442695, %v1547_v49  ;;  %v1548_v52 = vsub.f32 %v1528_v44, %v1543_v50 }
 0x75f   : > { %v1546_v53 = vpop.xlane.xlu0 %1545 }
 0x760   : > { %2927 = vpow2.f32 %v1550_v51  ;;  %v1552_v54 = vmul.f32 1.442695, %v1548_v52  ;;  %v1549_v55 = vsub.f32 %v1533_v42, %v1546_v53 }
 0x762   : > { %2929 = vpow2.f32 %v1552_v54  ;;  %v1554_v56 = vmul.f32 1.442695, %v1549_v55 }
 0x764   : > { %2931 = vpow2.f32 %v1554_v56 }
 0x76a   : > { %v2928_v58 = vpop.eup %2927 }
 0x76b   : > { %v1556_v59 = vsel %vm1188_vm9, %v2928_v58, 0.0 }
 0x76c   : > { %v2930_v60 = vpop.eup %2929  ;;  %1557 = vadd.xlane.f32.xlu0 %v1556_v59 }
 0x76d   : > { %v1559_v62 = vsel %vm1188_vm9, %v2930_v60, 0.0 }
 0x76e   : > { %v2932_v61 = vpop.eup %2931 }
 0x76f   : > { %v1562_v63 = vsel %vm1188_vm9, %v2932_v61, 0.0 }
 0x770   : > { %1560 = vadd.xlane.f32.xlu0 %v1559_v62  ;;  %1563 = vadd.xlane.f32.xlu1 %v1562_v63 }
 0x781   : > { %1575 = vrot.lane.b32.xlu1 %v3406_v35, %s3070_s25 }
 0x785   : > { %1655 = vrot.lane.b32.xlu1 %v3391_v28, %s3071_s16 }
 0x786   : > { %1573 = vrot.lane.b32.xlu0 %v3393_v30, %s3070_s25  ;;  %s3773_s25 = sld [smem:[#allocation28_spill]] (!%p2562_p1) }
 0x789   : > { %1657 = vrot.lane.b32.xlu1 %v3402_v33, %s3071_s16 }
 0x78a   : > { %1651 = vrot.lane.b32.xlu0 %v3395_v31, %s3072_s26 }
 0x78d   : > { %1653 = vrot.lane.b32.xlu1 %v3417_v43, %s3072_s26 }
 0x7f9   : > { %v1558_v0 = vpop.xlane.xlu0 %1557 }
 0x7fa   : > { %2933 = vrcp.f32 %v1558_v0 }
 0x7fd   : > { %v1564_v1 = vpop.xlane.xlu1 %1563  ;;  %v1561_v2 = vpop.xlane.xlu0 %1560 }
 0x7fe   : > { %2935 = vrcp.f32 %v1564_v1 }
 0x7ff   : > { %2937 = vrcp.f32 %v1561_v2 }
 0x801   : > { %v1576_v28 = vpop.permute.xlu1 %1575  ;;  %v1574_v3 = vpop.permute.xlu0 %1573 }
 0x802   : > { %2694 = vmatprep.subr.bf16.mxu1 %v1574_v3  ;;  %v1585_v33 = vsel %vm1230_vm7, %v1576_v28, 0 }
 0x803   : > { %2695 = vmatpush3.bf16.msra.mxu1 %v1574_v3 }
 0x804   : > { %2790 = vmatprep.subr.msk.bf16.mxu1 %vm1230_vm7, %v1576_v28  ;;  %v2934_v4 = vpop.eup %2933 }
 0x805   : > { %v1656_v5 = vpop.permute.xlu1 %1655  ;;  %v1568_v7 = vmul.f32 %v2934_v4, %v2928_v58  ;;  %v1652_v12 = vpop.permute.xlu0 %1651 }
 0x806   : > { %v1666_v11 = vsel %vm1127_vm6, %v1656_v5, 0 }
 0x807   : > { %2697 = vmatpush3.bf16.msra.mxu1 %v1585_v33 }
 0x808   : > { %v2936_v31 = vpop.eup %2935  ;;  %2791 = vmatprep.subr.msk.bf16.mxu1 %vm1127_vm6, %v1656_v5 }
 0x809   : > { %v2938_v43 = vpop.eup %2937  ;;  %v1570_v6 = vmul.f32 %v2936_v31, %v2932_v61  ;;  %v1658_v13 = vpop.permute.xlu1 %1657  ;;  %v2887_v31 = vld [vmem:[%s3280_s29] sm:$0xff]  }
 0x80a   : > { %v1569_v8 = vmul.f32 %v2938_v43, %v2930_v60  ;;  %v1669_v14 = vsel %vm1127_vm6, %v1658_v13, 0  ;;  %v2888_v43 = vld [vmem:[%s3280_s29 + $0x8] sm:$0xff]  }
 0x80b   : > { %v1572_v9 = vpack.c.bf16 %v1570_v6, %v1570_v6  ;;  %v2889_v6 = vld [vmem:[%s3280_s29 + $0x10] sm:$0xff]  }
 0x80c   : > { %v1571_v10 = vpack.c.bf16 %v1569_v8, %v1568_v7  ;;  %v2890_v7 = vld [vmem:[%s3280_s29 + $0x18] sm:$0xff]  }
 0x80d   : > { %v1654_v15 = vpop.permute.xlu1 %1653 }
 0x80e   : > { %2698 = vmatprep.mubr.msk.bf16.mxu1 %vm1188_vm9, %v1571_v10 }
 0x80f   : > { %2699 = vmatmul.mubr.msk.bf16.vlgmr.msra.gmra.mrb[8].mxu1 %vm1188_vm9, %v1572_v9 }
 0x810   : > { %2706 = vmatprep.mubr.msk.bf16.mxu1 %vm1127_vm6, %v1652_v12  ;;  %2703 = vmatpush3.bf16.xpose.msra.mxu1 %v1666_v11 }
 0x811   : > { %2792 = vmatprep.subr.msk.bf16.mxu1 %vm1127_vm6, %v1658_v13 }
 0x818   : > { %2705 = vmatpush3.bf16.xpose.msra.mxu1 %v1669_v14 }
 0x81f   : > { %2707 = vmatmul.mubr.msk.bf16.vlgmr.msra.gmra.mrb[12].mxu1 %vm1127_vm6, %v1654_v15 }
 0x8e2   : > { %v2700_v16 = vpop.f32.mrb[8].mxu1 }
 0x8e3   : > { %v1621_v17 = vpop.f32.mrb[9].mxu1 }
 0x8e4   : > { %v2701_v18 = vpop.f32.mrb[10].mxu1 }
 0x8e5   : > { %v1624_v19 = vpop.f32.mrb[11].mxu1 }
 0x8f2   : > { %v2708_v20 = vpop.f32.mrb[12].mxu1 }
 0x8f3   : > { %v1705_v21 = vpop.f32.mrb[13].mxu1  ;;  %v1714_v27 = vadd.f32 %v2708_v20, %v3433_v57 }
 0x8f4   : > { %v1706_v22 = vadd.f32 %v1705_v21, %v3433_v57  ;;  %v2709_v23 = vpop.f32.mrb[14].mxu1  ;;  %v2547_v21 = vld [vmem:[%s3770_s28] ss:$0 sm:$0xff] }
 0x8f5   : > { %v1708_v24 = vpop.f32.mrb[15].mxu1  ;;  %v1725_v40 = vsel %vm1188_vm9, %v1714_v27, -inf }
 0x8f6   : > { %v1709_v32 = vadd.f32 %v1708_v24, %v3433_v57  ;;  %v1719_v34 = vsel %vm1188_vm9, %v1706_v22, -inf }
 0x8f7   : > { %1720 = vmax.xlane.f32.xlu0 %v1719_v34 }
 0x8f8   : > { %v1722_v39 = vsel %vm1188_vm9, %v1709_v32, -inf }
 0x8f9   : > { %1723 = vmax.xlane.f32.xlu1 %v1722_v39 }
 0x8fb   : > { %1726 = vmax.xlane.f32.xlu0 %v1725_v40 }
 0x984   : > { %v1721_v41 = vpop.xlane.xlu0 %1720 }
 0x985   : > { %v1728_v42 = vsub.f32 %v1706_v22, %v1721_v41 }
 0x986   : > { %v1724_v44 = vpop.xlane.xlu1 %1723 }
 0x987   : > { %v1731_v45 = vmul.f32 1.442695, %v1728_v42  ;;  %v1729_v46 = vsub.f32 %v1709_v32, %v1724_v44 }
 0x988   : > { %v1727_v47 = vpop.xlane.xlu0 %1726 }
 0x989   : > { %2939 = vpow2.f32 %v1731_v45  ;;  %v1733_v48 = vmul.f32 1.442695, %v1729_v46  ;;  %v1730_v49 = vsub.f32 %v1714_v27, %v1727_v47 }
 0x98b   : > { %2941 = vpow2.f32 %v1733_v48  ;;  %v1735_v57 = vmul.f32 1.442695, %v1730_v49 }
 0x98d   : > { %2943 = vpow2.f32 %v1735_v57 }
 0x993   : > { %v2940_v50 = vpop.eup %2939 }
 0x994   : > { %v1737_v51 = vsel %vm1188_vm9, %v2940_v50, 0.0 }
 0x995   : > { %v2942_v52 = vpop.eup %2941  ;;  %1738 = vadd.xlane.f32.xlu0 %v1737_v51 }
 0x996   : > { %v1740_v54 = vsel %vm1188_vm9, %v2942_v52, 0.0 }
 0x997   : > { %v2944_v53 = vpop.eup %2943 }
 0x998   : > { %v1743_v55 = vsel %vm1188_vm9, %v2944_v53, 0.0 }
 0x999   : > { %1741 = vadd.xlane.f32.xlu0 %v1740_v54  ;;  %1744 = vadd.xlane.f32.xlu1 %v1743_v55 }
 0x9aa   : > { %1756 = vrot.lane.b32.xlu1 %v3406_v35, %s3072_s26 }
 0x9ae   : > { %1457 = vrot.lane.b32.xlu1 %v3482_v26, %s3071_s16 }
 0x9af   : > { %1754 = vrot.lane.b32.xlu0 %v3393_v30, %s3072_s26 }
 0x9b2   : > { %1459 = vrot.lane.b32.xlu1 %v3484_v29, %s3071_s16 }
 0x9b3   : > { %1461 = vrot.lane.b32.xlu0 %v3480_v25, %s3071_s16  ;;  %s3774_s16 = smov (!%p2562_p1), %s3773_s25 }
 0x9b6   : > { %1638 = vrot.lane.b32.xlu1 %v1621_v17, %s3069_s18 }
 0x9b7   : > { %1640 = vrot.lane.b32.xlu0 %v1624_v19, %s3069_s18 }
 0x9ba   : > { %1642 = vrot.lane.b32.xlu1 %v2700_v16, %s3069_s18 }
 0xa22   : > { %v1739_v56 = vpop.xlane.xlu0 %1738 }
 0xa23   : > { %2945 = vrcp.f32 %v1739_v56 }
 0xa26   : > { %v1745_v35 = vpop.xlane.xlu1 %1744  ;;  %v1742_v58 = vpop.xlane.xlu0 %1741 }
 0xa27   : > { %2947 = vrcp.f32 %v1745_v35  ;;  %v2891_v35 = vld [vmem:[%s3298_s6] sm:$0xff]  }
 0xa28   : > { %2949 = vrcp.f32 %v1742_v58  ;;  %2730 = vmatprep.subr.bf16.mxu1 %v2891_v35  ;;  %v2892_v58 = vld [vmem:[%s3298_s6 + $0x8] sm:$0xff]  }
 0xa29   : > { %2731 = vmatpush3.bf16.msra.mxu1 %v2891_v35 }
 0xa2a   : > { %v1757_v26 = vpop.permute.xlu1 %1756  ;;  %v1755_v30 = vpop.permute.xlu0 %1754  ;;  %2732 = vmatprep.subr.bf16.mxu1 %v2892_v58 }
 0xa2b   : > { %2710 = vmatprep.subr.bf16.mxu0 %v1755_v30  ;;  %v1766_v59 = vsel %vm1230_vm7, %v1757_v26, 0 }
 0xa2c   : > { %2711 = vmatpush3.bf16.msra.mxu0 %v1755_v30 }
 0xa2d   : > { %2793 = vmatprep.subr.msk.bf16.mxu0 %vm1230_vm7, %v1757_v26  ;;  %v2946_v60 = vpop.eup %2945  ;;  %2733 = vmatpush3.bf16.msra.mxu1 %v2892_v58 }
 0xa2e   : > { %v1458_v25 = vpop.permute.xlu1 %1457  ;;  %v1462_v29 = vpop.permute.xlu0 %1461  ;;  %v1749_v2 = vmul.f32 %v2946_v60, %v2940_v50 }
 0xa2f   : > { %1467 = vst.msk [vmem:[#allocation3] sm:$0xff] %vm1466_vm10, %v1458_v25  ;;  %1469 = vst.msk [vmem:[#allocation3 + $0x10] sm:$0xff] %vm1466_vm10, %v1462_v29 }
 0xa30   : > { %2713 = vmatpush3.bf16.msra.mxu0 %v1766_v59 }
 0xa31   : > { %v2948_v61 = vpop.eup %2947  ;;  %2718 = vmatprep.subr.bf16.mxu0 %v2887_v31 }
 0xa32   : > { %v2950_v62 = vpop.eup %2949  ;;  %v1751_v63 = vmul.f32 %v2948_v61, %v2944_v53  ;;  %v1460_v0 = vpop.permute.xlu1 %1459 }
 0xa33   : > { %v1641_v1 = vpop.permute.xlu0 %1640  ;;  %1468 = vst.msk [vmem:[#allocation3 + $0x8] sm:$0xff] %vm1466_vm10, %v1460_v0  ;;  %v1750_v28 = vmul.f32 %v2950_v62, %v2942_v52 }
 0xa34   : > { %1649 = vst.msk [vmem:[#allocation3 + $0x8] sm:$0xff] %vm1647_vm11, %v1641_v1  ;;  %v1753_v3 = vpack.c.bf16 %v1751_v63, %v1751_v63  ;;  %v2548_v1 = vld [vmem:[%s797_s20] ss:$0 sm:$0xff] }
 0xa35   : > { %v1752_v33 = vpack.c.bf16 %v1750_v28, %v1749_v2 }
 0xa36   : > { %v1639_v4 = vpop.permute.xlu1 %1638 }
 0xa37   : > { %1648 = vst.msk [vmem:[#allocation3] sm:$0xff] %vm1647_vm11, %v1639_v4  ;;  %2714 = vmatprep.mubr.msk.bf16.mxu0 %vm1188_vm9, %v1752_v33  ;;  %v2549_v4 = vld [vmem:[%s3771_s7] ss:$0 sm:$0xff] }
 0xa38   : > { %2715 = vmatmul.mubr.msk.bf16.vlgmr.msra.gmra.mrb[20].mxu0 %vm1188_vm9, %v1753_v3 }
 0xa39   : > { %2719 = vmatpush3.bf16.msra.mxu0 %v2887_v31 }
 0xa3a   : > { %v1643_v5 = vpop.permute.xlu1 %1642  ;;  %2720 = vmatprep.subr.bf16.mxu0 %v2888_v43 }
 0xa3b   : > { %1650 = vst.msk [vmem:[#allocation3 + $0x10] sm:$0xff] %vm1647_vm11, %v1643_v5 }
 0xa3d   : > { %2721 = vmatpush3.bf16.msra.mxu0 %v2888_v43 }
 0xa3e   : > { %2722 = vmatprep.subr.bf16.mxu0 %v2889_v6 }
 0xa41   : > { %2723 = vmatpush3.bf16.msra.mxu0 %v2889_v6 }
 0xa42   : > { %2724 = vmatprep.subr.bf16.mxu0 %v2890_v7 }
 0xa45   : > { %2725 = vmatpush3.bf16.msra.mxu0 %v2890_v7 }
 0xb0b   : > { %v2716_v8 = vpop.f32.mrb[20].mxu0 }
 0xb0c   : > { %v1802_v9 = vpop.f32.mrb[21].mxu0 }
 0xb0d   : > { %1819 = vrot.lane.b32.xlu0 %v1802_v9, %s3067_s30  ;;  %v2717_v10 = vpop.f32.mrb[22].mxu0 }
 0xb0e   : > { %v1805_v11 = vpop.f32.mrb[23].mxu0 }
 0xb0f   : > { %1821 = vrot.lane.b32.xlu1 %v1805_v11, %s3067_s30 }
 0xb11   : > { %1823 = vrot.lane.b32.xlu0 %v2716_v8, %s3067_s30  ;;  %s3772_s30 = scalar_lea.vmem %s3710_s15, %s3256_s1 }
 0xb7f   : > { %v1820_v12 = vpop.permute.xlu0 %1819 }
 0xb80   : > { %1829 = vst.msk [vmem:[#allocation3] sm:$0xff] %vm1828_vm12, %v1820_v12  ;;  %v2893_v12 = vld [vmem:[%s3307_s3] sm:$0xff]  }
 0xb81   : > { %v1822_v13 = vpop.permute.xlu1 %1821  ;;  %2738 = vmatprep.subr.bf16.mxu1 %v2893_v12 }
 0xb82   : > { %1830 = vst.msk [vmem:[#allocation3 + $0x8] sm:$0xff] %vm1828_vm12, %v1822_v13  ;;  %v2894_v13 = vld [vmem:[%s3307_s3 + $0x8] sm:$0xff]  }
 0xb83   : > { %v1824_v14 = vpop.permute.xlu0 %1823 }
 0xb84   : > { %1831 = vst.msk [vmem:[#allocation3 + $0x10] sm:$0xff] %vm1828_vm12, %v1824_v14  ;;  %v2895_v14 = vld [vmem:[%s3307_s3 + $0x10] sm:$0xff]  }
 0xb87   : > { %v1832_v15 = vld [vmem:[#allocation3] sm:$0xff] }
 0xb89   : > { %v1833_v16 = vld [vmem:[#allocation3 + $0x8] sm:$0xff] }
 0xb8a   : > { %v1835_v17 = vpack.c.bf16 %v1833_v16, %v1832_v15  ;;  %v2896_v15 = vld [vmem:[%s3307_s3 + $0x18] sm:$0xff]   ;;  %v2550_v16 = vld [vmem:[%s808_s8] ss:$0 sm:$0xff] }
 0xb8b   : > { %v1834_v18 = vld [vmem:[#allocation3 + $0x10] sm:$0xff] }
 0xb8c   : > { %2726 = vmatprep.mubr.msk.bf16.mxu0 %vm1869_vm13, %v1835_v17  ;;  %v1836_v19 = vpack.c.bf16 %v1834_v18, %v1834_v18 }
 0xb8e   : > { %2727 = vmatmul.mubr.msk.bf16.vlgmr.msra.gmra.mrb[24].mxu0 %vm1869_vm13, %v1836_v19 }
 0xc61   : > { %v2728_v20 = vpop.f32.mrb[24].mxu0 }
 0xc62   : > { %v1910_v22 = vpop.f32.mrb[25].mxu0  ;;  %v1926_v32 = vadd.f32 %v2728_v20, %v3359_v37 }
 0xc63   : > { %v1924_v23 = vadd.f32 %v1910_v22, %v3357_v36  ;;  %v2729_v24 = vpop.f32.mrb[26].mxu0 }
 0xc64   : > { %v1913_v27 = vpop.f32.mrb[27].mxu0  ;;  %v3569_v42 = vadd.f32 %v2547_v21, %v1926_v32 }
 0xc65   : > { %v3562_v34 = vadd.f32 %v2547_v21, %v1924_v23  ;;  %v1925_v39 = vadd.f32 %v1913_v27, %v3361_v38 }
 0xc66   : > { %v1945_v36 = vsel %vm966_vm5, %v3569_v42, 0.0 }
 0xc67   : > { %v3565_v40 = vadd.f32 %v2547_v21, %v1925_v39  ;;  %v1939_v41 = vsel %vm966_vm5, %v3562_v34, 0.0 }
 0xc68   : > { %1940 = vadd.xlane.f32.xlu1 %v1939_v41 }
 0xc69   : > { %v1942_v44 = vsel %vm966_vm5, %v3565_v40, 0.0 }
 0xc6a   : > { %1943 = vadd.xlane.f32.xlu0 %v1942_v44 }
 0xc6e   : > { %1946 = vadd.xlane.f32.xlu0 %v1945_v36 }
 0xcf5   : > { %v1941_v37 = vpop.xlane.xlu1 %1940 }
 0xcf6   : > { %v1948_v45 = vmul.f32 0.03125, %v1941_v37 }
 0xcf7   : > { %v1944_v46 = vpop.xlane.xlu0 %1943 }
 0xcf8   : > { %v1951_v38 = vsub.f32 %v3562_v34, %v1948_v45  ;;  %v1949_v47 = vmul.f32 0.03125, %v1944_v46 }
 0xcfa   : > { %v1952_v48 = vsub.f32 %v3565_v40, %v1949_v47  ;;  %v1954_v49 = vmul.f32 %v1951_v38, %v1951_v38 }
 0xcfb   : > { %v1947_v57 = vpop.xlane.xlu0 %1946 }
 0xcfc   : > { %v1950_v50 = vmul.f32 0.03125, %v1947_v57  ;;  %v1957_v51 = vsel %vm966_vm5, %v1954_v49, 0.0  ;;  %v1955_v52 = vmul.f32 %v1952_v48, %v1952_v48 }
 0xcfd   : > { %1958 = vadd.xlane.f32.xlu0 %v1957_v51 }
 0xcfe   : > { %v1953_v53 = vsub.f32 %v3569_v42, %v1950_v50  ;;  %v1960_v54 = vsel %vm966_vm5, %v1955_v52, 0.0 }
 0xcff   : > { %1961 = vadd.xlane.f32.xlu1 %v1960_v54 }
 0xd00   : > { %v1956_v55 = vmul.f32 %v1953_v53, %v1953_v53 }
 0xd02   : > { %v1963_v56 = vsel %vm966_vm5, %v1956_v55, 0.0 }
 0xd03   : > { %1964 = vadd.xlane.f32.xlu0 %v1963_v56 }
 0xd8a   : > { %v1959_v26 = vpop.xlane.xlu0 %1958 }
 0xd8b   : > { %v1966_v30 = vmul.f32 0.03125, %v1959_v26 }
 0xd8c   : > { %v1962_v25 = vpop.xlane.xlu1 %1961 }
 0xd8d   : > { %v1969_v29 = vadd.f32 1e-05, %v1966_v30  ;;  %v1967_v59 = vmul.f32 0.03125, %v1962_v25 }
 0xd8f   : > { %2951 = vrsqrt.f32 %v1969_v29  ;;  %v1970_v60 = vadd.f32 1e-05, %v1967_v59 }
 0xd90   : > { %v1965_v61 = vpop.xlane.xlu0 %1964 }
 0xd91   : > { %2953 = vrsqrt.f32 %v1970_v60  ;;  %v1968_v62 = vmul.f32 0.03125, %v1965_v61  ;;  %v2561_v61 = vld [vmem:[%s3772_s30] ss:$0 sm:$0xff]  ;;  %s3777_s30 = sld [smem:[#allocation29_spill]] (!%p2562_p1) }
 0xd93   : > { %v1971_v63 = vadd.f32 1e-05, %v1968_v62 }
 0xd95   : > { %2955 = vrsqrt.f32 %v1971_v63 }
 0xd99   : > { %v2952_v0 = vpop.eup %2951 }
 0xd9a   : > { %v1975_v2 = vmul.f32 %v2952_v0, %v1951_v38 }
 0xd9b   : > { %v2954_v28 = vpop.eup %2953 }
 0xd9c   : > { %v1976_v3 = vmul.f32 %v2954_v28, %v1952_v48  ;;  %v1984_v33 = vmul.f32 %v2548_v1, %v1975_v2 }
 0xd9e   : > { %v1985_v5 = vmul.f32 %v2548_v1, %v1976_v3  ;;  %v1993_v6 = vadd.f32 %v2549_v4, %v1984_v33 }
 0xd9f   : > { %v2956_v31 = vpop.eup %2955 }
 0xda0   : > { %v1977_v43 = vmul.f32 %v2956_v31, %v1953_v53  ;;  %v1994_v7 = vadd.f32 %v2549_v4, %v1985_v5 }
 0xda2   : > { %v1986_v8 = vmul.f32 %v2548_v1, %v1977_v43  ;;  %v1996_v9 = vpack.c.bf16 %v1994_v7, %v1993_v6  ;;  %v2229_v7 = vld [vmem:[%s3774_s16 + $0x8] sm:$0xff] (!%p2562_p1) }
 0xda4   : > { %2734 = vmatprep.mubr.msk.bf16.mxu1 %vm966_vm5, %v1996_v9  ;;  %v1995_v10 = vadd.f32 %v2549_v4, %v1986_v8  ;;  %v2230_v8 = vld [vmem:[%s3774_s16 + $0x10] sm:$0xff] (!%p2562_p1)  ;;  %v3073_v9 = vmov (!%p2562_p1), 0.0|0.0  }
 0xda5   : > { %2770 = vmatprep.subr.bf16.mxu0 (!%p2562_p1), %v3073_v9 }
 0xda6   : > { %v1997_v11 = vpack.c.bf16 %v1995_v10, %v1995_v10 }
 0xda8   : > { %2735 = vmatmul.mubr.msk.bf16.vlgmr.msra.gmra.mrb[16].mxu1 %vm966_vm5, %v1997_v11  ;;  %v2231_v11 = vld [vmem:[%s3774_s16 + $0x18] sm:$0xff] (!%p2562_p1) }
 0xda9   : > { %2739 = vmatpush3.bf16.msra.mxu1 %v2893_v12  ;;  %v3075_v12 = vmov (!%p2562_p1), 0.0  }
 0xdaa   : > { %2740 = vmatprep.subr.bf16.mxu1 %v2894_v13  ;;  %2758 = vmatprep.mubr.msk.f32.mxu0 (!%p2562_p1), %vm3074_vm15, %v3075_v12 }
 0xdad   : > { %2741 = vmatpush3.bf16.msra.mxu1 %v2894_v13  ;;  %v2774_v13 = vpack.c.bf16 (!%p2562_p1), %v2231_v11, %v2230_v8 }
 0xdae   : > { %2742 = vmatprep.subr.bf16.mxu1 %v2895_v14 }
 0xdb1   : > { %2743 = vmatpush3.bf16.msra.mxu1 %v2895_v14 }
 0xdb2   : > { %2744 = vmatprep.subr.bf16.mxu1 %v2896_v15 }
 0xdb5   : > { %2745 = vmatpush3.bf16.msra.mxu1 %v2896_v15 }
 0xe7b   : > { %v2736_v17 = vpop.f32.mrb[16].mxu1 }
 0xe7c   : > { %v2070_v18 = vadd.f32 %v2736_v17, %v2550_v16  ;;  %v2061_v19 = vpop.f32.mrb[17].mxu1 }
 0xe7d   : > { %v2062_v20 = vadd.f32 %v2550_v16, %v2061_v19  ;;  %v2737_v21 = vpop.f32.mrb[18].mxu1 }
 0xe7e   : > { %v2077_v22 = vmul.f32 %v2070_v18, %v2070_v18  ;;  %v2064_v23 = vpop.f32.mrb[19].mxu1 }
 0xe7f   : > { %v2075_v24 = vmul.f32 %v2062_v20, %v2062_v20  ;;  %v2065_v27 = vadd.f32 %v2550_v16, %v2064_v23  ;;  %v2232_v23 = vld [vmem:[%s3777_s30] sm:$0x1] (!%p2562_p1) }
 0xe80   : > { %v2080_v32 = vmul.f32 %v2077_v22, %v2070_v18 }
 0xe81   : > { %v2078_v39 = vmul.f32 %v2075_v24, %v2062_v20  ;;  %v2076_v41 = vmul.f32 %v2065_v27, %v2065_v27 }
 0xe82   : > { %v2083_v44 = vmul.f32 0.044715, %v2080_v32 }
 0xe83   : > { %v2081_v36 = vmul.f32 0.044715, %v2078_v39  ;;  %v2079_v37 = vmul.f32 %v2076_v41, %v2065_v27 }
 0xe84   : > { %v2086_v45 = vadd.f32 %v2083_v44, %v2070_v18 }
 0xe85   : > { %v2084_v46 = vadd.f32 %v2081_v36, %v2062_v20  ;;  %v2082_v38 = vmul.f32 0.044715, %v2079_v37 }
 0xe86   : > { %v2089_v47 = vmul.f32 0.7978846, %v2086_v45 }
 0xe87   : > { %v2087_v48 = vmul.f32 0.7978846, %v2084_v46  ;;  %v2085_v49 = vadd.f32 %v2082_v38, %v2065_v27 }
 0xe88   : > { %2957 = vtanh.f32 %v2089_v47 }
 0xe89   : > { %2959 = vtanh.f32 %v2087_v48  ;;  %v2088_v57 = vmul.f32 0.7978846, %v2085_v49 }
 0xe8b   : > { %2961 = vtanh.f32 %v2088_v57 }
 0xe92   : > { %v2958_v50 = vpop.eup %2957 }
 0xe93   : > { %v2960_v51 = vpop.eup %2959  ;;  %v2095_v52 = vadd.f32 1.0, %v2958_v50 }
 0xe94   : > { %v2093_v53 = vadd.f32 1.0, %v2960_v51 }
 0xe95   : > { %v2962_v54 = vpop.eup %2961  ;;  %v2098_v55 = vmul.f32 0.5, %v2095_v52 }
 0xe96   : > { %v2096_v56 = vmul.f32 0.5, %v2093_v53  ;;  %v2094_v35 = vadd.f32 1.0, %v2962_v54 }
 0xe97   : > { %v2101_v26 = vmul.f32 %v2098_v55, %v2070_v18  ;;  %v2210_v18 = vld [vmem:[%s3775_s0] sm:$0x1] (!%p2562_p1) }
 0xe98   : > { %v2097_v58 = vmul.f32 0.5, %v2094_v35  ;;  %v2099_v30 = vmul.f32 %v2096_v56, %v2062_v20  ;;  %v2211_v20 = vld [vmem:[%s3776_s17] sm:$0x1] (!%p2562_p1) }
 0xe99   : > { %v2103_v59 = vpack.c.bf16 %v2101_v26, %v2101_v26 }
 0xe9a   : > { %v2100_v25 = vmul.f32 %v2097_v58, %v2065_v27 }
 0xe9c   : > { %v2102_v29 = vpack.c.bf16 %v2100_v25, %v2099_v30 }
 0xe9e   : > { %2746 = vmatprep.mubr.msk.bf16.mxu1 %vm1869_vm13, %v2102_v29 }
 0xe9f   : > { %2747 = vmatmul.mubr.msk.bf16.vlgmr.msra.gmra.mrb[20].mxu1 %vm1869_vm13, %v2103_v59 }
 0xf72   : > { %v2748_v60 = vpop.f32.mrb[20].mxu1 }
 0xf73   : > { %v2192_v62 = vadd.f32 %v2748_v60, %v3569_v42  ;;  %v2176_v63 = vpop.f32.mrb[21].mxu1 }
 0xf74   : > { %v2190_v0 = vadd.f32 %v2176_v63, %v3562_v34  ;;  %v2749_v1 = vpop.f32.mrb[22].mxu1  ;;  %2209 = sbr.rel (%p2562_p1) target bundleno = 4488 (0x1188), region = 108 }
 0xf75   : > { %v2202_v2 = vadd.f32 %v2561_v61, %v2192_v62  ;;  %v2179_v28 = vpop.f32.mrb[23].mxu1 }
 0xf76   : > { %v2200_v3 = vadd.f32 %v2561_v61, %v2190_v0  ;;  %v2191_v33 = vadd.f32 %v2179_v28, %v3565_v40  ;;  %v2228_v40 = vld [vmem:[%s3773_s25] sm:$0xff] (!%p2562_p1) }
 0xf77   : > { %2205 = vst.msk [vmem:[#allocation2 + $0x10] sm:$0xff] %vm966_vm5, %v2202_v2  ;;  %v2771_v10 = vpack.c.bf16 (!%p2562_p1), %v2229_v7, %v2228_v40 }
 0xf78   : > { %2203 = vst.msk [vmem:[#allocation2] sm:$0xff] %vm966_vm5, %v2200_v3  ;;  %v2201_v4 = vadd.f32 %v2561_v61, %v2191_v33  ;;  %v2213_v42 = vsel (!%p2562_p1), %vm2212_vm14, %v2200_v3, 0.0 }
 0xf79   : > { %2214 = vadd.xlane.f32.xlu0 (!%p2562_p1), %v2213_v42  ;;  %2772 = vmatpush3.bf16.msra.mxu0 (!%p2562_p1), %v2771_v10 }
 0xf7a   : > { %2204 = vst.msk [vmem:[#allocation2 + $0x8] sm:$0xff] %vm966_vm5, %v2201_v4  ;;  %2773 = vmatprep.subr.bf16.mxu0 (!%p2562_p1), %v3073_v9 }
 0xf7d   : > { %2775 = vmatpush3.bf16.msra.mxu0 %v2774_v13 }
0x1006   : > { %v2215_v34 = vpop.xlane.xlu0 %2214 }
0x1007   : > { %v2216_v5 = vmul.f32 0.03125, %v2215_v34 }
0x1009   : > { %v2217_v31 = vsub.f32 %v2200_v3, %v2216_v5 }
0x100b   : > { %v2218_v43 = vmul.f32 %v2217_v31, %v2217_v31 }
0x100d   : > { %v2219_v6 = vsel %vm2212_vm14, %v2218_v43, 0.0 }
0x100e   : > { %2220 = vadd.xlane.f32.xlu0 %v2219_v6 }
0x109b   : > { %v2221_v14 = vpop.xlane.xlu0 %2220 }
0x109c   : > { %v2222_v15 = vmul.f32 0.03125, %v2221_v14 }
0x109e   : > { %v2223_v16 = vadd.f32 1e-05, %v2222_v15 }
0x10a0   : > { %2963 = vrsqrt.f32 %v2223_v16 }
0x10aa   : > { %v2964_v17 = vpop.eup %2963 }
0x10ab   : > { %v2225_v19 = vmul.f32 %v2964_v17, %v2217_v31 }
0x10ad   : > { %v2226_v21 = vmul.f32 %v2225_v19, %v2210_v18 }
0x10af   : > { %v2227_v22 = vadd.f32 %v2226_v21, %v2211_v20 }
0x10b1   : > { %2759 = vmatmul.mubr.msk.f32.vlgmr.msra.gmra.mrb[0].mxu0 %vm966_vm5, %v2227_v22 }
0x1184   : > { %v2302_v24 = vpop.f32.mrb[0].mxu0 }
0x1185   : > { %v2303_v27 = vadd.f32 %v2302_v24, %v2232_v23  ;;  %v2760_v32 = vpop.f32.mrb[1].mxu0 }
0x1187   : > { %2306 = vst [vmem:[%s3315_s21] sm:$0x1] %v2303_v27 }
0x1188 PF: > { %s3778_s1 = sld [smem:[#allocation9_spill]]  ;;  %s2320_s27 = sshll.u32 %s3315_s21, 4  ;;  %s2321_s27 = int_to_ptr.vmem [resolvable:$true] %s2320_s27 }
0x1189   : > { %s3780_s2 = sld [smem:[#allocation30_spill]]  ;;  %s3782_s23 = sand.u32 1, %s3035_s22  }
0x118a   : > { %s2308_s6 = scalar_lea.sflag [#allocation5], %s3782_s23  ;;  %s2965_s0 = scalar_lea.vmem %s2321_s27, 16 }
0x118b   : > { %p2966_p2 = scmp.ne.s32.totalorder %s2321_s27, %s2965_s0  ;;  %s3076_s7 = smov [#allocation4]  }
0x118c   : > { %s2969_s20 = sshll.u32 %s3076_s7, 4  ;;  %s2970_s20 = int_to_ptr.vmem [resolvable:$false] %s2969_s20 }
0x118d   : > { %p2967_p4 = pnand %p2966_p2, %p3231_p3  ;;  %s2971_s17 = scalar_lea.vmem %s2970_s20, 32 }
0x118e   : > { %s2564_s25 = sshll.u32 %s3778_s1, 4  ;;  %p2972_p6 = scmp.lt.s32.totalorder %s2321_s27, %s2970_s20 }
0x118f   : > { %s3781_s28 = smov %s3780_s2  ;;  %s3645_s24 = scalar_lea.hbm %s3780_s2, %s2564_s25 }
0x1190   : > { %p2968_p5 = pneg %p2967_p4  ;;  %p2973_p7 = scmp.lt.s32.totalorder %s2971_s17, %s2965_s0 }
0x1192   : > { %p2974_p8 = por %p2973_p7, %p2972_p6 }
0x1194   : > { %p2975_p10 = pnand %p2974_p8, %p2968_p5 }
0x1196   : > { %2978 = shalt.err (!%p2975_p10)
}
0x1197   : > { %s2979_s21 = scalar_lea.hbm %s3645_s24, 16  ;;  %s2983_s30 = scalar_lea.hbm %s3781_s28, 32 }
0x1198   : > { %p2980_p11 = scmp.ne.s32.totalorder %s3645_s24, %s2979_s21  ;;  %p2984_p0 = scmp.lt.u32.totalorder %s3645_s24, %s3781_s28 }
0x1199   : > { %p2985_p1 = scmp.lt.u32.totalorder %s2983_s30, %s2979_s21  ;;  %p2987_p4 = scmp.lt.u32.totalorder %s2979_s21, %s3645_s24 }
0x119a   : > { %p2981_p12 = pnand %p2980_p11, %p3231_p3 }
0x119b   : > { %p2986_p2 = por %p2985_p1, %p2984_p0 }
0x119c   : > { %p2982_p13 = pneg %p2981_p12 }
0x119d   : > { %p2988_p5 = por %p2987_p4, %p2986_p2 }
0x119f   : > { %p2989_p6 = pnand %p2988_p5, %p2982_p13 }
0x11a1   : > { %2992 = shalt.err (!%p2989_p6)
}
0x11a2   : > { %2795 = dma.vmem_to_hbm [thread:$0]  (%p3231_p3), %s2321_s27, 16, %s3645_s24, %s2308_s6  }
0x11a3 PF: > { %s3783_s26 = sld [smem:[#allocation12_spill]]  ;;  %s3784_s29 = sld [smem:[#allocation7_spill]] }
0x11a9   : > { %p2801_p7 = scmp.ge.s32.totalorder %s3783_s26, 2  ;;  %s2332_s23 = sand.u32 1, %s3784_s29  }
0x11aa   : > { %s2333_s0 = scalar_lea.sflag [#allocation5], %s2332_s23 }
0x11ab   : > { %p2798_p8 = pnand %p2801_p7, %p3241_p9 }
0x11ad   : > { %3026 = dma.done.wait (!%p2798_p8), %s2333_s0, 16  }
0x11ae   : > { %3028 = vsyncadd (!%p2798_p8), %s2333_s0, 4294967280  ;;  %s33_s26 = sadd.s32 1, %s3783_s26   ;;  %s3786_s7 = sld [smem:[#allocation8_spill]] }
0x11af   : > { %p30_p10 = scmp.ge.s32.totalorder %s33_s26, 6   ;;  %s3787_s23 = sld [smem:[#allocation17_spill]] }
0x11b0   : > { %s3788_s24 = sld [smem:[#allocation10_spill]]  ;;  %s3789_s2 = sld [smem:[#allocation11_spill]] }
0x11b1   : > { %s3790_s25 = sld [smem:[#allocation13_spill]]  ;;  %s3791_s3 = sld [smem:[#allocation15_spill]] }
0x11b2   : > { %s3792_s1 = smov %s3035_s22  ;;  %32 = sbr.rel (!%p30_p10) target bundleno = 19 (0x13), region = 176 }
0x11b4   : > { %s3793_s22 = smov %s3786_s7 }
0x11b9   :  { %2337 = vsyncpa [#allocation5], 1 }
0x11ba   :  { %2339 = vsyncpa [#allocation5 + $0x1], 1 }

</bundles_post_ra>
